<compile_context>
chip_gen: v6e
topology: v6e:2x2x1
jax: 0.10.0
libtpu: 0.0.40
codegen_flags: <defaults>
</compile_context>

<pallas_src>
import jax
import jax.numpy as jnp
from jax import lax
from jax.experimental import pallas as pl
from jax.experimental.pallas import tpu as pltpu


# ----------------------------------------------------------------------------
# In-kernel helpers (traced inside the Pallas kernel bodies)
# ----------------------------------------------------------------------------
def _apply_gates(gates, c, H):
    """LSTM cell update from pre-activation gates (B, 4H), PyTorch i,f,g,o order.

    Full-width transcendentals (one sigmoid + one tanh over all 4H=128 lanes)
    followed by lane slices, instead of 4 quarter-width EUP issues."""
    sg = jax.nn.sigmoid(gates)
    th = jnp.tanh(gates)
    i = sg[:, 0 * H:1 * H]
    f = sg[:, 1 * H:2 * H]
    g = th[:, 2 * H:3 * H]
    o = sg[:, 3 * H:4 * H]
    c_new = f * c + i * g
    h_new = o * jnp.tanh(c_new)
    return h_new, c_new


def _lstm_unrolled(x_bf, wih, whh, bias, h, c, collect_fn=None):
    """Single-layer LSTM over a batch-first (B, L, Din) value.

    Input projection = one contiguous 2D matmul; the recurrence is a fully
    unrolled Python loop (L static, small), so xp indexing is static."""
    B, L, Din = x_bf.shape
    H = whh.shape[0]
    xp = jnp.dot(x_bf.reshape(B * L, Din), wih,
                 preferred_element_type=jnp.float32) + bias
    xp = xp.reshape(B, L, 4 * H)
    for t in range(L):
        gates = xp[:, t, :] + jnp.dot(h, whh, preferred_element_type=jnp.float32)
        h, c = _apply_gates(gates, c, H)
        if collect_fn is not None:
            collect_fn(t, h)
    return h, c


# ----------------------------------------------------------------------------
# Fused Pallas kernels
# ----------------------------------------------------------------------------
def seq2seq_train_kernel(x_ref, y_ref,
                         e_wih_ref, e_whh_ref, e_b_ref,
                         d_wih_ref, d_whh_ref, d_b_ref,
                         fc_w_ref, fc_b_ref,
                         out_ref, ys_scr):
    """Encoder LSTM -> decoder LSTM -> Linear, all in one kernel.

    x_ref : (B, Lx, Din)   batch-first encoder input
    y_ref : (B, Ly, Din)   batch-first decoder (teacher-forced) input
    *_wih : (Din, 4H)  *_whh : (H, 4H)  *_b : (1, 4H)   (W^T, b_ih+b_hh)
    fc_w  : (H, Dout)  fc_b : (1, Dout)
    out_ref: (B, Ly, Dout)
    ys_scr : (B, Ly, H) VMEM scratch holding all decoder hidden states.
    """
    B, Ly, _ = y_ref.shape
    H = e_whh_ref.shape[0]
    Dout = fc_w_ref.shape[1]

    h0 = jnp.zeros((B, H), jnp.float32)
    c0 = jnp.zeros((B, H), jnp.float32)

    # Encoder: only the final (h, c) is needed.
    h, c = _lstm_unrolled(x_ref[...], e_wih_ref[...], e_whh_ref[...],
                          e_b_ref[...], h0, c0)

    # Decoder: stash every hidden state in VMEM scratch (static sublane index).
    def collect(t, h_t):
        ys_scr[:, t, :] = h_t

    _lstm_unrolled(y_ref[...], d_wih_ref[...], d_whh_ref[...],
                   d_b_ref[...], h, c, collect_fn=collect)

    # Final Linear: one contiguous 2D matmul over all B*Ly rows, one store.
    ys = ys_scr[...].reshape(B * Ly, H)
    out = jnp.dot(ys, fc_w_ref[...],
                  preferred_element_type=jnp.float32) + fc_b_ref[...]
    out_ref[...] = out.reshape(B, Ly, Dout)


def seq2seq_eval_kernel(x_ref, y_ref,
                        e_wih_ref, e_whh_ref, e_b_ref,
                        d_wih_ref, d_whh_ref, d_b_ref,
                        fc_w_ref, fc_b_ref,
                        out_ref):
    """Encoder LSTM -> autoregressive decode (pred_len steps) -> Linear, fused.

    The fed-back output, h and c never leave registers/VMEM.
    out_ref: (B, pred_len, Dout); requires Dout == Din (as in the PyTorch module).
    """
    B = x_ref.shape[0]
    H = e_whh_ref.shape[0]
    pred_len = out_ref.shape[1]

    h0 = jnp.zeros((B, H), jnp.float32)
    c0 = jnp.zeros((B, H), jnp.float32)
    h, c = _lstm_unrolled(x_ref[...], e_wih_ref[...], e_whh_ref[...],
                          e_b_ref[...], h0, c0)

    d_wih = d_wih_ref[...]
    d_whh = d_whh_ref[...]
    d_b = d_b_ref[...]
    fc_w = fc_w_ref[...]
    fc_b = fc_b_ref[...]

    out = y_ref[:, 0, :]                      # first decoder input, (B, Din)
    for step in range(pred_len):              # static, fully unrolled
        gates = (jnp.dot(out, d_wih, preferred_element_type=jnp.float32)
                 + jnp.dot(h, d_whh, preferred_element_type=jnp.float32)
                 + d_b)
        h, c = _apply_gates(gates, c, H)
        out = jnp.dot(h, fc_w, preferred_element_type=jnp.float32) + fc_b
        out_ref[:, step, :] = out


# ----------------------------------------------------------------------------
# Wrapper: one pallas_call per forward, no wrapper-side transposes
# ----------------------------------------------------------------------------
_VMEM = pl.BlockSpec(memory_space=pltpu.MemorySpace.VMEM)


def seq2seq_forward(params, x, y, train=True, pred_len=4):
    """Matches Seq2Seq.forward. x, y: (B, L, d_in) batch-first (like PyTorch)."""
    enc, dec, fc = params
    B = x.shape[0]
    H = enc["whh_t"].shape[0]
    Dout = fc["w_t"].shape[1]

    args = (x, y,
            enc["wih_t"], enc["whh_t"], enc["bias"],
            dec["wih_t"], dec["whh_t"], dec["bias"],
            fc["w_t"], fc["b"])

    if train:
        Ly = y.shape[1]
        return pl.pallas_call(
            seq2seq_train_kernel,
            out_shape=jax.ShapeDtypeStruct((B, Ly, Dout), jnp.float32),
            in_specs=[_VMEM] * 10,
            out_specs=_VMEM,
            scratch_shapes=[pltpu.VMEM((B, Ly, H), jnp.float32)],
        )(*args)
    else:
        return pl.pallas_call(
            seq2seq_eval_kernel,
            out_shape=jax.ShapeDtypeStruct((B, pred_len, Dout), jnp.float32),
            in_specs=[_VMEM] * 10,
            out_specs=_VMEM,
        )(*args)


# ----------------------------------------------------------------------------
# Pure-JAX reference (correctness check only)
# ----------------------------------------------------------------------------
def lstm_ref(x_bf, wih, whh, b_ih, b_hh, h0, c0):
    def step(carry, x_t):
        h, c = carry
        gates = x_t @ wih.T + b_ih + h @ whh.T + b_hh
        i, f, g, o = jnp.split(gates, 4, axis=-1)
        c = jax.nn.sigmoid(f) * c + jax.nn.sigmoid(i) * jnp.tanh(g)
        h = jax.nn.sigmoid(o) * jnp.tanh(c)
        return (h, c), h
    (h, c), ys = lax.scan(step, (h0, c0), jnp.transpose(x_bf, (1, 0, 2)))
    return jnp.transpose(ys, (1, 0, 2)), h, c


def seq2seq_train_ref(raw, x, y):
    (e_wih, e_whh, e_bih, e_bhh), (d_wih, d_whh, d_bih, d_bhh), (W_fc, b_fc) = raw
    B = x.shape[0]
    H = e_whh.shape[1]
    h0 = jnp.zeros((B, H), jnp.float32)
    c0 = jnp.zeros((B, H), jnp.float32)
    _, h, c = lstm_ref(x, e_wih, e_whh, e_bih, e_bhh, h0, c0)
    ys, _, _ = lstm_ref(y, d_wih, d_whh, d_bih, d_bhh, h, c)
    return ys @ W_fc.T + b_fc


def seq2seq_eval_ref(raw, x, y, pred_len):
    (e_wih, e_whh, e_bih, e_bhh), (d_wih, d_whh, d_bih, d_bhh), (W_fc, b_fc) = raw
    B = x.shape[0]
    H = e_whh.shape[1]
    h0 = jnp.zeros((B, H), jnp.float32)
    c0 = jnp.zeros((B, H), jnp.float32)
    _, h, c = lstm_ref(x, e_wih, e_whh, e_bih, e_bhh, h0, c0)
    out = y[:, :1, :]
    outs = []
    for _ in range(pred_len):
        ys, h, c = lstm_ref(out, d_wih, d_whh, d_bih, d_bhh, h, c)
        out = ys @ W_fc.T + b_fc
        outs.append(out)
    return jnp.concatenate(outs, axis=1)


# ----------------------------------------------------------------------------
# Deterministic parameter init (PyTorch-style uniform(-1/sqrt(H), 1/sqrt(H)))
# ----------------------------------------------------------------------------
def init_lstm(key, d_in, d_model):
    k = 1.0 / jnp.sqrt(jnp.float32(d_model))
    k0, k1, k2, k3 = jax.random.split(key, 4)
    W_ih = jax.random.uniform(k0, (4 * d_model, d_in), jnp.float32, -k, k)
    W_hh = jax.random.uniform(k1, (4 * d_model, d_model), jnp.float32, -k, k)
    b_ih = jax.random.uniform(k2, (4 * d_model,), jnp.float32, -k, k)
    b_hh = jax.random.uniform(k3, (4 * d_model,), jnp.float32, -k, k)
    return W_ih, W_hh, b_ih, b_hh


def pack_lstm(raw):
    W_ih, W_hh, b_ih, b_hh = raw
    return {"wih_t": W_ih.T, "whh_t": W_hh.T,
            "bias": (b_ih + b_hh)[None, :]}


if __name__ == "__main__":
    B, Lx, Ly = 2, 8, 8
    d_in, d_model, d_out, pred_len = 4, 32, 4, 4

    key = jax.random.PRNGKey(0)
    kenc, kdec, kfc, kx, ky = jax.random.split(key, 5)

    enc_raw = init_lstm(kenc, d_in, d_model)
    dec_raw = init_lstm(kdec, d_in, d_model)
    kf = 1.0 / jnp.sqrt(jnp.float32(d_model))
    kfc1, kfc2 = jax.random.split(kfc)
    W_fc = jax.random.uniform(kfc1, (d_out, d_model), jnp.float32, -kf, kf)
    b_fc = jax.random.uniform(kfc2, (d_out,), jnp.float32, -kf, kf)

    params = (pack_lstm(enc_raw), pack_lstm(dec_raw),
              {"w_t": W_fc.T, "b": b_fc[None, :]})
    raw = (enc_raw, dec_raw, (W_fc, b_fc))

    x = jax.random.normal(kx, (B, Lx, d_in), jnp.float32)
    y = jax.random.normal(ky, (B, Ly, d_in), jnp.float32)

    # train=True path (single fused pallas_call)
    out = jax.block_until_ready(seq2seq_forward(params, x, y, train=True))
    ref = seq2seq_train_ref(raw, x, y)
    assert out.shape == (B, Ly, d_out)
    assert jnp.allclose(out, ref, atol=1e-4, rtol=1e-4), "train path mismatch"

    # train=False autoregressive path (single fused pallas_call; d_out == d_in)
    out_eval = jax.block_until_ready(
        seq2seq_forward(params, x, y, train=False, pred_len=pred_len))
    ref_eval = seq2seq_eval_ref(raw, x, y, pred_len)
    assert out_eval.shape == (B, pred_len, d_out)
    assert jnp.allclose(out_eval, ref_eval, atol=1e-4, rtol=1e-4), "eval path mismatch"

    print("KERNEL_OK")
</pallas_src>

<mosaic_0001>
module attributes {stable_mosaic.version = 11 : i64} {
  func.func @seq2seq_train_kernel(%arg0: memref<2x8x4xf32, #tpu.memory_space<vmem>>, %arg1: memref<2x8x4xf32, #tpu.memory_space<vmem>>, %arg2: memref<4x128xf32, #tpu.memory_space<vmem>>, %arg3: memref<32x128xf32, #tpu.memory_space<vmem>>, %arg4: memref<1x128xf32, #tpu.memory_space<vmem>>, %arg5: memref<4x128xf32, #tpu.memory_space<vmem>>, %arg6: memref<32x128xf32, #tpu.memory_space<vmem>>, %arg7: memref<1x128xf32, #tpu.memory_space<vmem>>, %arg8: memref<32x4xf32, #tpu.memory_space<vmem>>, %arg9: memref<1x4xf32, #tpu.memory_space<vmem>>, %arg10: memref<2x8x4xf32, #tpu.memory_space<vmem>>, %arg11: memref<2x8x32xf32, #tpu.memory_space<vmem>>) attributes {dimension_semantics = [], scalar_prefetch = 0 : i64, scratch_operands = 1 : i64, tpu.core_type = #tpu.core_type<tc>} {
    %cst = arith.constant 0.000000e+00 : f32
    %0 = vector.broadcast %cst : f32 to vector<2x32xf32>
    %cst_0 = arith.constant 0.000000e+00 : f32
    %1 = vector.broadcast %cst_0 : f32 to vector<2x32xf32>
    %c0 = arith.constant 0 : index
    %c0_1 = arith.constant 0 : index
    %c0_2 = arith.constant 0 : index
    %2 = vector.load %arg0[%c0, %c0_1, %c0_2] : memref<2x8x4xf32, #tpu.memory_space<vmem>>, vector<2x8x4xf32>
    %c0_3 = arith.constant 0 : index
    %c0_4 = arith.constant 0 : index
    %3 = vector.load %arg2[%c0_3, %c0_4] : memref<4x128xf32, #tpu.memory_space<vmem>>, vector<4x128xf32>
    %c0_5 = arith.constant 0 : index
    %c0_6 = arith.constant 0 : index
    %4 = vector.load %arg3[%c0_5, %c0_6] : memref<32x128xf32, #tpu.memory_space<vmem>>, vector<32x128xf32>
    %c0_7 = arith.constant 0 : index
    %c0_8 = arith.constant 0 : index
    %5 = vector.load %arg4[%c0_7, %c0_8] : memref<1x128xf32, #tpu.memory_space<vmem>>, vector<1x128xf32>
    %6 = vector.shape_cast %2 : vector<2x8x4xf32> to vector<16x4xf32>
    %cst_9 = arith.constant dense<0.000000e+00> : vector<16x128xf32>
    %7 = tpu.matmul %6, %3, %cst_9 {dimension_numbers = #tpu.dot_dimension_numbers<[1], [0], [0], [1], [0, 0, 1, 1], [], []>} : vector<16x4xf32>, vector<4x128xf32>, vector<16x128xf32> -> vector<16x128xf32>
    %8 = vector.broadcast %5 : vector<1x128xf32> to vector<16x128xf32>
    %9 = arith.addf %7, %8 : vector<16x128xf32>
    %10 = vector.shape_cast %9 : vector<16x128xf32> to vector<2x8x128xf32>
    %11 = vector.extract_strided_slice %10 {offsets = [0, 0, 0], sizes = [2, 1, 128], strides = [1, 1, 1]} : vector<2x8x128xf32> to vector<2x1x128xf32>
    %12 = vector.shape_cast %11 : vector<2x1x128xf32> to vector<2x128xf32>
    %cst_10 = arith.constant dense<0.000000e+00> : vector<2x128xf32>
    %13 = tpu.matmul %0, %4, %cst_10 {dimension_numbers = #tpu.dot_dimension_numbers<[1], [0], [0], [1], [0, 0, 1, 1], [], []>} : vector<2x32xf32>, vector<32x128xf32>, vector<2x128xf32> -> vector<2x128xf32>
    %14 = arith.addf %12, %13 : vector<2x128xf32>
    %15 = arith.negf %14 : vector<2x128xf32>
    %16 = math.exp %15 : vector<2x128xf32>
    %cst_11 = arith.constant 1.000000e+00 : f32
    %17 = vector.broadcast %cst_11 : f32 to vector<2x128xf32>
    %18 = arith.addf %17, %16 : vector<2x128xf32>
    %19 = arith.divf %17, %18 : vector<2x128xf32>
    %20 = math.tanh %14 : vector<2x128xf32>
    %21 = vector.extract_strided_slice %19 {offsets = [0, 0], sizes = [2, 32], strides = [1, 1]} : vector<2x128xf32> to vector<2x32xf32>
    %22 = vector.extract_strided_slice %19 {offsets = [0, 32], sizes = [2, 32], strides = [1, 1]} : vector<2x128xf32> to vector<2x32xf32>
    %23 = vector.extract_strided_slice %20 {offsets = [0, 64], sizes = [2, 32], strides = [1, 1]} : vector<2x128xf32> to vector<2x32xf32>
    %24 = vector.extract_strided_slice %19 {offsets = [0, 96], sizes = [2, 32], strides = [1, 1]} : vector<2x128xf32> to vector<2x32xf32>
    %25 = arith.mulf %22, %1 : vector<2x32xf32>
    %26 = arith.mulf %21, %23 : vector<2x32xf32>
    %27 = arith.addf %25, %26 : vector<2x32xf32>
    %28 = math.tanh %27 : vector<2x32xf32>
    %29 = arith.mulf %24, %28 : vector<2x32xf32>
    %30 = vector.extract_strided_slice %10 {offsets = [0, 1, 0], sizes = [2, 1, 128], strides = [1, 1, 1]} : vector<2x8x128xf32> to vector<2x1x128xf32>
    %31 = vector.shape_cast %30 : vector<2x1x128xf32> to vector<2x128xf32>
    %cst_12 = arith.constant dense<0.000000e+00> : vector<2x128xf32>
    %32 = tpu.matmul %29, %4, %cst_12 {dimension_numbers = #tpu.dot_dimension_numbers<[1], [0], [0], [1], [0, 0, 1, 1], [], []>} : vector<2x32xf32>, vector<32x128xf32>, vector<2x128xf32> -> vector<2x128xf32>
    %33 = arith.addf %31, %32 : vector<2x128xf32>
    %34 = arith.negf %33 : vector<2x128xf32>
    %35 = math.exp %34 : vector<2x128xf32>
    %cst_13 = arith.constant 1.000000e+00 : f32
    %36 = vector.broadcast %cst_13 : f32 to vector<2x128xf32>
    %37 = arith.addf %36, %35 : vector<2x128xf32>
    %38 = arith.divf %36, %37 : vector<2x128xf32>
    %39 = math.tanh %33 : vector<2x128xf32>
    %40 = vector.extract_strided_slice %38 {offsets = [0, 0], sizes = [2, 32], strides = [1, 1]} : vector<2x128xf32> to vector<2x32xf32>
    %41 = vector.extract_strided_slice %38 {offsets = [0, 32], sizes = [2, 32], strides = [1, 1]} : vector<2x128xf32> to vector<2x32xf32>
    %42 = vector.extract_strided_slice %39 {offsets = [0, 64], sizes = [2, 32], strides = [1, 1]} : vector<2x128xf32> to vector<2x32xf32>
    %43 = vector.extract_strided_slice %38 {offsets = [0, 96], sizes = [2, 32], strides = [1, 1]} : vector<2x128xf32> to vector<2x32xf32>
    %44 = arith.mulf %41, %27 : vector<2x32xf32>
    %45 = arith.mulf %40, %42 : vector<2x32xf32>
    %46 = arith.addf %44, %45 : vector<2x32xf32>
    %47 = math.tanh %46 : vector<2x32xf32>
    %48 = arith.mulf %43, %47 : vector<2x32xf32>
    %49 = vector.extract_strided_slice %10 {offsets = [0, 2, 0], sizes = [2, 1, 128], strides = [1, 1, 1]} : vector<2x8x128xf32> to vector<2x1x128xf32>
    %50 = vector.shape_cast %49 : vector<2x1x128xf32> to vector<2x128xf32>
    %cst_14 = arith.constant dense<0.000000e+00> : vector<2x128xf32>
    %51 = tpu.matmul %48, %4, %cst_14 {dimension_numbers = #tpu.dot_dimension_numbers<[1], [0], [0], [1], [0, 0, 1, 1], [], []>} : vector<2x32xf32>, vector<32x128xf32>, vector<2x128xf32> -> vector<2x128xf32>
    %52 = arith.addf %50, %51 : vector<2x128xf32>
    %53 = arith.negf %52 : vector<2x128xf32>
    %54 = math.exp %53 : vector<2x128xf32>
    %cst_15 = arith.constant 1.000000e+00 : f32
    %55 = vector.broadcast %cst_15 : f32 to vector<2x128xf32>
    %56 = arith.addf %55, %54 : vector<2x128xf32>
    %57 = arith.divf %55, %56 : vector<2x128xf32>
    %58 = math.tanh %52 : vector<2x128xf32>
    %59 = vector.extract_strided_slice %57 {offsets = [0, 0], sizes = [2, 32], strides = [1, 1]} : vector<2x128xf32> to vector<2x32xf32>
    %60 = vector.extract_strided_slice %57 {offsets = [0, 32], sizes = [2, 32], strides = [1, 1]} : vector<2x128xf32> to vector<2x32xf32>
    %61 = vector.extract_strided_slice %58 {offsets = [0, 64], sizes = [2, 32], strides = [1, 1]} : vector<2x128xf32> to vector<2x32xf32>
    %62 = vector.extract_strided_slice %57 {offsets = [0, 96], sizes = [2, 32], strides = [1, 1]} : vector<2x128xf32> to vector<2x32xf32>
    %63 = arith.mulf %60, %46 : vector<2x32xf32>
    %64 = arith.mulf %59, %61 : vector<2x32xf32>
    %65 = arith.addf %63, %64 : vector<2x32xf32>
    %66 = math.tanh %65 : vector<2x32xf32>
    %67 = arith.mulf %62, %66 : vector<2x32xf32>
    %68 = vector.extract_strided_slice %10 {offsets = [0, 3, 0], sizes = [2, 1, 128], strides = [1, 1, 1]} : vector<2x8x128xf32> to vector<2x1x128xf32>
    %69 = vector.shape_cast %68 : vector<2x1x128xf32> to vector<2x128xf32>
    %cst_16 = arith.constant dense<0.000000e+00> : vector<2x128xf32>
    %70 = tpu.matmul %67, %4, %cst_16 {dimension_numbers = #tpu.dot_dimension_numbers<[1], [0], [0], [1], [0, 0, 1, 1], [], []>} : vector<2x32xf32>, vector<32x128xf32>, vector<2x128xf32> -> vector<2x128xf32>
    %71 = arith.addf %69, %70 : vector<2x128xf32>
    %72 = arith.negf %71 : vector<2x128xf32>
    %73 = math.exp %72 : vector<2x128xf32>
    %cst_17 = arith.constant 1.000000e+00 : f32
    %74 = vector.broadcast %cst_17 : f32 to vector<2x128xf32>
    %75 = arith.addf %74, %73 : vector<2x128xf32>
    %76 = arith.divf %74, %75 : vector<2x128xf32>
    %77 = math.tanh %71 : vector<2x128xf32>
    %78 = vector.extract_strided_slice %76 {offsets = [0, 0], sizes = [2, 32], strides = [1, 1]} : vector<2x128xf32> to vector<2x32xf32>
    %79 = vector.extract_strided_slice %76 {offsets = [0, 32], sizes = [2, 32], strides = [1, 1]} : vector<2x128xf32> to vector<2x32xf32>
    %80 = vector.extract_strided_slice %77 {offsets = [0, 64], sizes = [2, 32], strides = [1, 1]} : vector<2x128xf32> to vector<2x32xf32>
    %81 = vector.extract_strided_slice %76 {offsets = [0, 96], sizes = [2, 32], strides = [1, 1]} : vector<2x128xf32> to vector<2x32xf32>
    %82 = arith.mulf %79, %65 : vector<2x32xf32>
    %83 = arith.mulf %78, %80 : vector<2x32xf32>
    %84 = arith.addf %82, %83 : vector<2x32xf32>
    %85 = math.tanh %84 : vector<2x32xf32>
    %86 = arith.mulf %81, %85 : vector<2x32xf32>
    %87 = vector.extract_strided_slice %10 {offsets = [0, 4, 0], sizes = [2, 1, 128], strides = [1, 1, 1]} : vector<2x8x128xf32> to vector<2x1x128xf32>
    %88 = vector.shape_cast %87 : vector<2x1x128xf32> to vector<2x128xf32>
    %cst_18 = arith.constant dense<0.000000e+00> : vector<2x128xf32>
    %89 = tpu.matmul %86, %4, %cst_18 {dimension_numbers = #tpu.dot_dimension_numbers<[1], [0], [0], [1], [0, 0, 1, 1], [], []>} : vector<2x32xf32>, vector<32x128xf32>, vector<2x128xf32> -> vector<2x128xf32>
    %90 = arith.addf %88, %89 : vector<2x128xf32>
    %91 = arith.negf %90 : vector<2x128xf32>
    %92 = math.exp %91 : vector<2x128xf32>
    %cst_19 = arith.constant 1.000000e+00 : f32
    %93 = vector.broadcast %cst_19 : f32 to vector<2x128xf32>
    %94 = arith.addf %93, %92 : vector<2x128xf32>
    %95 = arith.divf %93, %94 : vector<2x128xf32>
    %96 = math.tanh %90 : vector<2x128xf32>
    %97 = vector.extract_strided_slice %95 {offsets = [0, 0], sizes = [2, 32], strides = [1, 1]} : vector<2x128xf32> to vector<2x32xf32>
    %98 = vector.extract_strided_slice %95 {offsets = [0, 32], sizes = [2, 32], strides = [1, 1]} : vector<2x128xf32> to vector<2x32xf32>
    %99 = vector.extract_strided_slice %96 {offsets = [0, 64], sizes = [2, 32], strides = [1, 1]} : vector<2x128xf32> to vector<2x32xf32>
    %100 = vector.extract_strided_slice %95 {offsets = [0, 96], sizes = [2, 32], strides = [1, 1]} : vector<2x128xf32> to vector<2x32xf32>
    %101 = arith.mulf %98, %84 : vector<2x32xf32>
    %102 = arith.mulf %97, %99 : vector<2x32xf32>
    %103 = arith.addf %101, %102 : vector<2x32xf32>
    %104 = math.tanh %103 : vector<2x32xf32>
    %105 = arith.mulf %100, %104 : vector<2x32xf32>
    %106 = vector.extract_strided_slice %10 {offsets = [0, 5, 0], sizes = [2, 1, 128], strides = [1, 1, 1]} : vector<2x8x128xf32> to vector<2x1x128xf32>
    %107 = vector.shape_cast %106 : vector<2x1x128xf32> to vector<2x128xf32>
    %cst_20 = arith.constant dense<0.000000e+00> : vector<2x128xf32>
    %108 = tpu.matmul %105, %4, %cst_20 {dimension_numbers = #tpu.dot_dimension_numbers<[1], [0], [0], [1], [0, 0, 1, 1], [], []>} : vector<2x32xf32>, vector<32x128xf32>, vector<2x128xf32> -> vector<2x128xf32>
    %109 = arith.addf %107, %108 : vector<2x128xf32>
    %110 = arith.negf %109 : vector<2x128xf32>
    %111 = math.exp %110 : vector<2x128xf32>
    %cst_21 = arith.constant 1.000000e+00 : f32
    %112 = vector.broadcast %cst_21 : f32 to vector<2x128xf32>
    %113 = arith.addf %112, %111 : vector<2x128xf32>
    %114 = arith.divf %112, %113 : vector<2x128xf32>
    %115 = math.tanh %109 : vector<2x128xf32>
    %116 = vector.extract_strided_slice %114 {offsets = [0, 0], sizes = [2, 32], strides = [1, 1]} : vector<2x128xf32> to vector<2x32xf32>
    %117 = vector.extract_strided_slice %114 {offsets = [0, 32], sizes = [2, 32], strides = [1, 1]} : vector<2x128xf32> to vector<2x32xf32>
    %118 = vector.extract_strided_slice %115 {offsets = [0, 64], sizes = [2, 32], strides = [1, 1]} : vector<2x128xf32> to vector<2x32xf32>
    %119 = vector.extract_strided_slice %114 {offsets = [0, 96], sizes = [2, 32], strides = [1, 1]} : vector<2x128xf32> to vector<2x32xf32>
    %120 = arith.mulf %117, %103 : vector<2x32xf32>
    %121 = arith.mulf %116, %118 : vector<2x32xf32>
    %122 = arith.addf %120, %121 : vector<2x32xf32>
    %123 = math.tanh %122 : vector<2x32xf32>
    %124 = arith.mulf %119, %123 : vector<2x32xf32>
    %125 = vector.extract_strided_slice %10 {offsets = [0, 6, 0], sizes = [2, 1, 128], strides = [1, 1, 1]} : vector<2x8x128xf32> to vector<2x1x128xf32>
    %126 = vector.shape_cast %125 : vector<2x1x128xf32> to vector<2x128xf32>
    %cst_22 = arith.constant dense<0.000000e+00> : vector<2x128xf32>
    %127 = tpu.matmul %124, %4, %cst_22 {dimension_numbers = #tpu.dot_dimension_numbers<[1], [0], [0], [1], [0, 0, 1, 1], [], []>} : vector<2x32xf32>, vector<32x128xf32>, vector<2x128xf32> -> vector<2x128xf32>
    %128 = arith.addf %126, %127 : vector<2x128xf32>
    %129 = arith.negf %128 : vector<2x128xf32>
    %130 = math.exp %129 : vector<2x128xf32>
    %cst_23 = arith.constant 1.000000e+00 : f32
    %131 = vector.broadcast %cst_23 : f32 to vector<2x128xf32>
    %132 = arith.addf %131, %130 : vector<2x128xf32>
    %133 = arith.divf %131, %132 : vector<2x128xf32>
    %134 = math.tanh %128 : vector<2x128xf32>
    %135 = vector.extract_strided_slice %133 {offsets = [0, 0], sizes = [2, 32], strides = [1, 1]} : vector<2x128xf32> to vector<2x32xf32>
    %136 = vector.extract_strided_slice %133 {offsets = [0, 32], sizes = [2, 32], strides = [1, 1]} : vector<2x128xf32> to vector<2x32xf32>
    %137 = vector.extract_strided_slice %134 {offsets = [0, 64], sizes = [2, 32], strides = [1, 1]} : vector<2x128xf32> to vector<2x32xf32>
    %138 = vector.extract_strided_slice %133 {offsets = [0, 96], sizes = [2, 32], strides = [1, 1]} : vector<2x128xf32> to vector<2x32xf32>
    %139 = arith.mulf %136, %122 : vector<2x32xf32>
    %140 = arith.mulf %135, %137 : vector<2x32xf32>
    %141 = arith.addf %139, %140 : vector<2x32xf32>
    %142 = math.tanh %141 : vector<2x32xf32>
    %143 = arith.mulf %138, %142 : vector<2x32xf32>
    %144 = vector.extract_strided_slice %10 {offsets = [0, 7, 0], sizes = [2, 1, 128], strides = [1, 1, 1]} : vector<2x8x128xf32> to vector<2x1x128xf32>
    %145 = vector.shape_cast %144 : vector<2x1x128xf32> to vector<2x128xf32>
    %cst_24 = arith.constant dense<0.000000e+00> : vector<2x128xf32>
    %146 = tpu.matmul %143, %4, %cst_24 {dimension_numbers = #tpu.dot_dimension_numbers<[1], [0], [0], [1], [0, 0, 1, 1], [], []>} : vector<2x32xf32>, vector<32x128xf32>, vector<2x128xf32> -> vector<2x128xf32>
    %147 = arith.addf %145, %146 : vector<2x128xf32>
    %148 = arith.negf %147 : vector<2x128xf32>
    %149 = math.exp %148 : vector<2x128xf32>
    %cst_25 = arith.constant 1.000000e+00 : f32
    %150 = vector.broadcast %cst_25 : f32 to vector<2x128xf32>
    %151 = arith.addf %150, %149 : vector<2x128xf32>
    %152 = arith.divf %150, %151 : vector<2x128xf32>
    %153 = math.tanh %147 : vector<2x128xf32>
    %154 = vector.extract_strided_slice %152 {offsets = [0, 0], sizes = [2, 32], strides = [1, 1]} : vector<2x128xf32> to vector<2x32xf32>
    %155 = vector.extract_strided_slice %152 {offsets = [0, 32], sizes = [2, 32], strides = [1, 1]} : vector<2x128xf32> to vector<2x32xf32>
    %156 = vector.extract_strided_slice %153 {offsets = [0, 64], sizes = [2, 32], strides = [1, 1]} : vector<2x128xf32> to vector<2x32xf32>
    %157 = vector.extract_strided_slice %152 {offsets = [0, 96], sizes = [2, 32], strides = [1, 1]} : vector<2x128xf32> to vector<2x32xf32>
    %158 = arith.mulf %155, %141 : vector<2x32xf32>
    %159 = arith.mulf %154, %156 : vector<2x32xf32>
    %160 = arith.addf %158, %159 : vector<2x32xf32>
    %161 = math.tanh %160 : vector<2x32xf32>
    %162 = arith.mulf %157, %161 : vector<2x32xf32>
    %c0_26 = arith.constant 0 : index
    %c0_27 = arith.constant 0 : index
    %c0_28 = arith.constant 0 : index
    %163 = vector.load %arg1[%c0_26, %c0_27, %c0_28] : memref<2x8x4xf32, #tpu.memory_space<vmem>>, vector<2x8x4xf32>
    %c0_29 = arith.constant 0 : index
    %c0_30 = arith.constant 0 : index
    %164 = vector.load %arg5[%c0_29, %c0_30] : memref<4x128xf32, #tpu.memory_space<vmem>>, vector<4x128xf32>
    %c0_31 = arith.constant 0 : index
    %c0_32 = arith.constant 0 : index
    %165 = vector.load %arg6[%c0_31, %c0_32] : memref<32x128xf32, #tpu.memory_space<vmem>>, vector<32x128xf32>
    %c0_33 = arith.constant 0 : index
    %c0_34 = arith.constant 0 : index
    %166 = vector.load %arg7[%c0_33, %c0_34] : memref<1x128xf32, #tpu.memory_space<vmem>>, vector<1x128xf32>
    %167 = vector.shape_cast %163 : vector<2x8x4xf32> to vector<16x4xf32>
    %cst_35 = arith.constant dense<0.000000e+00> : vector<16x128xf32>
    %168 = tpu.matmul %167, %164, %cst_35 {dimension_numbers = #tpu.dot_dimension_numbers<[1], [0], [0], [1], [0, 0, 1, 1], [], []>} : vector<16x4xf32>, vector<4x128xf32>, vector<16x128xf32> -> vector<16x128xf32>
    %169 = vector.broadcast %166 : vector<1x128xf32> to vector<16x128xf32>
    %170 = arith.addf %168, %169 : vector<16x128xf32>
    %171 = vector.shape_cast %170 : vector<16x128xf32> to vector<2x8x128xf32>
    %172 = vector.extract_strided_slice %171 {offsets = [0, 0, 0], sizes = [2, 1, 128], strides = [1, 1, 1]} : vector<2x8x128xf32> to vector<2x1x128xf32>
    %173 = vector.shape_cast %172 : vector<2x1x128xf32> to vector<2x128xf32>
    %cst_36 = arith.constant dense<0.000000e+00> : vector<2x128xf32>
    %174 = tpu.matmul %162, %165, %cst_36 {dimension_numbers = #tpu.dot_dimension_numbers<[1], [0], [0], [1], [0, 0, 1, 1], [], []>} : vector<2x32xf32>, vector<32x128xf32>, vector<2x128xf32> -> vector<2x128xf32>
    %175 = arith.addf %173, %174 : vector<2x128xf32>
    %176 = arith.negf %175 : vector<2x128xf32>
    %177 = math.exp %176 : vector<2x128xf32>
    %cst_37 = arith.constant 1.000000e+00 : f32
    %178 = vector.broadcast %cst_37 : f32 to vector<2x128xf32>
    %179 = arith.addf %178, %177 : vector<2x128xf32>
    %180 = arith.divf %178, %179 : vector<2x128xf32>
    %181 = math.tanh %175 : vector<2x128xf32>
    %182 = vector.extract_strided_slice %180 {offsets = [0, 0], sizes = [2, 32], strides = [1, 1]} : vector<2x128xf32> to vector<2x32xf32>
    %183 = vector.extract_strided_slice %180 {offsets = [0, 32], sizes = [2, 32], strides = [1, 1]} : vector<2x128xf32> to vector<2x32xf32>
    %184 = vector.extract_strided_slice %181 {offsets = [0, 64], sizes = [2, 32], strides = [1, 1]} : vector<2x128xf32> to vector<2x32xf32>
    %185 = vector.extract_strided_slice %180 {offsets = [0, 96], sizes = [2, 32], strides = [1, 1]} : vector<2x128xf32> to vector<2x32xf32>
    %186 = arith.mulf %183, %160 : vector<2x32xf32>
    %187 = arith.mulf %182, %184 : vector<2x32xf32>
    %188 = arith.addf %186, %187 : vector<2x32xf32>
    %189 = math.tanh %188 : vector<2x32xf32>
    %190 = arith.mulf %185, %189 : vector<2x32xf32>
    %c0_38 = arith.constant 0 : index
    %c0_39 = arith.constant 0 : index
    %c0_40 = arith.constant 0 : index
    %191 = vector.load %arg11[%c0_38, %c0_39, %c0_40] : memref<2x8x32xf32, #tpu.memory_space<vmem>>, vector<2x1x32xf32>
    %192 = vector.shape_cast %191 : vector<2x1x32xf32> to vector<2x32xf32>
    %193 = vector.shape_cast %190 : vector<2x32xf32> to vector<2x1x32xf32>
    tpu.vector_store %arg11[%c0_38, %c0_39, %c0_40], %193 {strides = array<i32>} : memref<2x8x32xf32, #tpu.memory_space<vmem>>, vector<2x1x32xf32>,
    %194 = vector.extract_strided_slice %171 {offsets = [0, 1, 0], sizes = [2, 1, 128], strides = [1, 1, 1]} : vector<2x8x128xf32> to vector<2x1x128xf32>
    %195 = vector.shape_cast %194 : vector<2x1x128xf32> to vector<2x128xf32>
    %cst_41 = arith.constant dense<0.000000e+00> : vector<2x128xf32>
    %196 = tpu.matmul %190, %165, %cst_41 {dimension_numbers = #tpu.dot_dimension_numbers<[1], [0], [0], [1], [0, 0, 1, 1], [], []>} : vector<2x32xf32>, vector<32x128xf32>, vector<2x128xf32> -> vector<2x128xf32>
    %197 = arith.addf %195, %196 : vector<2x128xf32>
    %198 = arith.negf %197 : vector<2x128xf32>
    %199 = math.exp %198 : vector<2x128xf32>
    %cst_42 = arith.constant 1.000000e+00 : f32
    %200 = vector.broadcast %cst_42 : f32 to vector<2x128xf32>
    %201 = arith.addf %200, %199 : vector<2x128xf32>
    %202 = arith.divf %200, %201 : vector<2x128xf32>
    %203 = math.tanh %197 : vector<2x128xf32>
    %204 = vector.extract_strided_slice %202 {offsets = [0, 0], sizes = [2, 32], strides = [1, 1]} : vector<2x128xf32> to vector<2x32xf32>
    %205 = vector.extract_strided_slice %202 {offsets = [0, 32], sizes = [2, 32], strides = [1, 1]} : vector<2x128xf32> to vector<2x32xf32>
    %206 = vector.extract_strided_slice %203 {offsets = [0, 64], sizes = [2, 32], strides = [1, 1]} : vector<2x128xf32> to vector<2x32xf32>
    %207 = vector.extract_strided_slice %202 {offsets = [0, 96], sizes = [2, 32], strides = [1, 1]} : vector<2x128xf32> to vector<2x32xf32>
    %208 = arith.mulf %205, %188 : vector<2x32xf32>
    %209 = arith.mulf %204, %206 : vector<2x32xf32>
    %210 = arith.addf %208, %209 : vector<2x32xf32>
    %211 = math.tanh %210 : vector<2x32xf32>
    %212 = arith.mulf %207, %211 : vector<2x32xf32>
    %c0_43 = arith.constant 0 : index
    %c1 = arith.constant 1 : index
    %c0_44 = arith.constant 0 : index
    %213 = vector.load %arg11[%c0_43, %c1, %c0_44] : memref<2x8x32xf32, #tpu.memory_space<vmem>>, vector<2x1x32xf32>
    %214 = vector.shape_cast %213 : vector<2x1x32xf32> to vector<2x32xf32>
    %215 = vector.shape_cast %212 : vector<2x32xf32> to vector<2x1x32xf32>
    tpu.vector_store %arg11[%c0_43, %c1, %c0_44], %215 {strides = array<i32>} : memref<2x8x32xf32, #tpu.memory_space<vmem>>, vector<2x1x32xf32>,
    %216 = vector.extract_strided_slice %171 {offsets = [0, 2, 0], sizes = [2, 1, 128], strides = [1, 1, 1]} : vector<2x8x128xf32> to vector<2x1x128xf32>
    %217 = vector.shape_cast %216 : vector<2x1x128xf32> to vector<2x128xf32>
    %cst_45 = arith.constant dense<0.000000e+00> : vector<2x128xf32>
    %218 = tpu.matmul %212, %165, %cst_45 {dimension_numbers = #tpu.dot_dimension_numbers<[1], [0], [0], [1], [0, 0, 1, 1], [], []>} : vector<2x32xf32>, vector<32x128xf32>, vector<2x128xf32> -> vector<2x128xf32>
    %219 = arith.addf %217, %218 : vector<2x128xf32>
    %220 = arith.negf %219 : vector<2x128xf32>
    %221 = math.exp %220 : vector<2x128xf32>
    %cst_46 = arith.constant 1.000000e+00 : f32
    %222 = vector.broadcast %cst_46 : f32 to vector<2x128xf32>
    %223 = arith.addf %222, %221 : vector<2x128xf32>
    %224 = arith.divf %222, %223 : vector<2x128xf32>
    %225 = math.tanh %219 : vector<2x128xf32>
    %226 = vector.extract_strided_slice %224 {offsets = [0, 0], sizes = [2, 32], strides = [1, 1]} : vector<2x128xf32> to vector<2x32xf32>
    %227 = vector.extract_strided_slice %224 {offsets = [0, 32], sizes = [2, 32], strides = [1, 1]} : vector<2x128xf32> to vector<2x32xf32>
    %228 = vector.extract_strided_slice %225 {offsets = [0, 64], sizes = [2, 32], strides = [1, 1]} : vector<2x128xf32> to vector<2x32xf32>
    %229 = vector.extract_strided_slice %224 {offsets = [0, 96], sizes = [2, 32], strides = [1, 1]} : vector<2x128xf32> to vector<2x32xf32>
    %230 = arith.mulf %227, %210 : vector<2x32xf32>
    %231 = arith.mulf %226, %228 : vector<2x32xf32>
    %232 = arith.addf %230, %231 : vector<2x32xf32>
    %233 = math.tanh %232 : vector<2x32xf32>
    %234 = arith.mulf %229, %233 : vector<2x32xf32>
    %c0_47 = arith.constant 0 : index
    %c2 = arith.constant 2 : index
    %c0_48 = arith.constant 0 : index
    %235 = vector.load %arg11[%c0_47, %c2, %c0_48] : memref<2x8x32xf32, #tpu.memory_space<vmem>>, vector<2x1x32xf32>
    %236 = vector.shape_cast %235 : vector<2x1x32xf32> to vector<2x32xf32>
    %237 = vector.shape_cast %234 : vector<2x32xf32> to vector<2x1x32xf32>
    tpu.vector_store %arg11[%c0_47, %c2, %c0_48], %237 {strides = array<i32>} : memref<2x8x32xf32, #tpu.memory_space<vmem>>, vector<2x1x32xf32>,
    %238 = vector.extract_strided_slice %171 {offsets = [0, 3, 0], sizes = [2, 1, 128], strides = [1, 1, 1]} : vector<2x8x128xf32> to vector<2x1x128xf32>
    %239 = vector.shape_cast %238 : vector<2x1x128xf32> to vector<2x128xf32>
    %cst_49 = arith.constant dense<0.000000e+00> : vector<2x128xf32>
    %240 = tpu.matmul %234, %165, %cst_49 {dimension_numbers = #tpu.dot_dimension_numbers<[1], [0], [0], [1], [0, 0, 1, 1], [], []>} : vector<2x32xf32>, vector<32x128xf32>, vector<2x128xf32> -> vector<2x128xf32>
    %241 = arith.addf %239, %240 : vector<2x128xf32>
    %242 = arith.negf %241 : vector<2x128xf32>
    %243 = math.exp %242 : vector<2x128xf32>
    %cst_50 = arith.constant 1.000000e+00 : f32
    %244 = vector.broadcast %cst_50 : f32 to vector<2x128xf32>
    %245 = arith.addf %244, %243 : vector<2x128xf32>
    %246 = arith.divf %244, %245 : vector<2x128xf32>
    %247 = math.tanh %241 : vector<2x128xf32>
    %248 = vector.extract_strided_slice %246 {offsets = [0, 0], sizes = [2, 32], strides = [1, 1]} : vector<2x128xf32> to vector<2x32xf32>
    %249 = vector.extract_strided_slice %246 {offsets = [0, 32], sizes = [2, 32], strides = [1, 1]} : vector<2x128xf32> to vector<2x32xf32>
    %250 = vector.extract_strided_slice %247 {offsets = [0, 64], sizes = [2, 32], strides = [1, 1]} : vector<2x128xf32> to vector<2x32xf32>
    %251 = vector.extract_strided_slice %246 {offsets = [0, 96], sizes = [2, 32], strides = [1, 1]} : vector<2x128xf32> to vector<2x32xf32>
    %252 = arith.mulf %249, %232 : vector<2x32xf32>
    %253 = arith.mulf %248, %250 : vector<2x32xf32>
    %254 = arith.addf %252, %253 : vector<2x32xf32>
    %255 = math.tanh %254 : vector<2x32xf32>
    %256 = arith.mulf %251, %255 : vector<2x32xf32>
    %c0_51 = arith.constant 0 : index
    %c3 = arith.constant 3 : index
    %c0_52 = arith.constant 0 : index
    %257 = vector.load %arg11[%c0_51, %c3, %c0_52] : memref<2x8x32xf32, #tpu.memory_space<vmem>>, vector<2x1x32xf32>
    %258 = vector.shape_cast %257 : vector<2x1x32xf32> to vector<2x32xf32>
    %259 = vector.shape_cast %256 : vector<2x32xf32> to vector<2x1x32xf32>
    tpu.vector_store %arg11[%c0_51, %c3, %c0_52], %259 {strides = array<i32>} : memref<2x8x32xf32, #tpu.memory_space<vmem>>, vector<2x1x32xf32>,
    %260 = vector.extract_strided_slice %171 {offsets = [0, 4, 0], sizes = [2, 1, 128], strides = [1, 1, 1]} : vector<2x8x128xf32> to vector<2x1x128xf32>
    %261 = vector.shape_cast %260 : vector<2x1x128xf32> to vector<2x128xf32>
    %cst_53 = arith.constant dense<0.000000e+00> : vector<2x128xf32>
    %262 = tpu.matmul %256, %165, %cst_53 {dimension_numbers = #tpu.dot_dimension_numbers<[1], [0], [0], [1], [0, 0, 1, 1], [], []>} : vector<2x32xf32>, vector<32x128xf32>, vector<2x128xf32> -> vector<2x128xf32>
    %263 = arith.addf %261, %262 : vector<2x128xf32>
    %264 = arith.negf %263 : vector<2x128xf32>
    %265 = math.exp %264 : vector<2x128xf32>
    %cst_54 = arith.constant 1.000000e+00 : f32
    %266 = vector.broadcast %cst_54 : f32 to vector<2x128xf32>
    %267 = arith.addf %266, %265 : vector<2x128xf32>
    %268 = arith.divf %266, %267 : vector<2x128xf32>
    %269 = math.tanh %263 : vector<2x128xf32>
    %270 = vector.extract_strided_slice %268 {offsets = [0, 0], sizes = [2, 32], strides = [1, 1]} : vector<2x128xf32> to vector<2x32xf32>
    %271 = vector.extract_strided_slice %268 {offsets = [0, 32], sizes = [2, 32], strides = [1, 1]} : vector<2x128xf32> to vector<2x32xf32>
    %272 = vector.extract_strided_slice %269 {offsets = [0, 64], sizes = [2, 32], strides = [1, 1]} : vector<2x128xf32> to vector<2x32xf32>
    %273 = vector.extract_strided_slice %268 {offsets = [0, 96], sizes = [2, 32], strides = [1, 1]} : vector<2x128xf32> to vector<2x32xf32>
    %274 = arith.mulf %271, %254 : vector<2x32xf32>
    %275 = arith.mulf %270, %272 : vector<2x32xf32>
    %276 = arith.addf %274, %275 : vector<2x32xf32>
    %277 = math.tanh %276 : vector<2x32xf32>
    %278 = arith.mulf %273, %277 : vector<2x32xf32>
    %c0_55 = arith.constant 0 : index
    %c4 = arith.constant 4 : index
    %c0_56 = arith.constant 0 : index
    %279 = vector.load %arg11[%c0_55, %c4, %c0_56] : memref<2x8x32xf32, #tpu.memory_space<vmem>>, vector<2x1x32xf32>
    %280 = vector.shape_cast %279 : vector<2x1x32xf32> to vector<2x32xf32>
    %281 = vector.shape_cast %278 : vector<2x32xf32> to vector<2x1x32xf32>
    tpu.vector_store %arg11[%c0_55, %c4, %c0_56], %281 {strides = array<i32>} : memref<2x8x32xf32, #tpu.memory_space<vmem>>, vector<2x1x32xf32>,
    %282 = vector.extract_strided_slice %171 {offsets = [0, 5, 0], sizes = [2, 1, 128], strides = [1, 1, 1]} : vector<2x8x128xf32> to vector<2x1x128xf32>
    %283 = vector.shape_cast %282 : vector<2x1x128xf32> to vector<2x128xf32>
    %cst_57 = arith.constant dense<0.000000e+00> : vector<2x128xf32>
    %284 = tpu.matmul %278, %165, %cst_57 {dimension_numbers = #tpu.dot_dimension_numbers<[1], [0], [0], [1], [0, 0, 1, 1], [], []>} : vector<2x32xf32>, vector<32x128xf32>, vector<2x128xf32> -> vector<2x128xf32>
    %285 = arith.addf %283, %284 : vector<2x128xf32>
    %286 = arith.negf %285 : vector<2x128xf32>
    %287 = math.exp %286 : vector<2x128xf32>
    %cst_58 = arith.constant 1.000000e+00 : f32
    %288 = vector.broadcast %cst_58 : f32 to vector<2x128xf32>
    %289 = arith.addf %288, %287 : vector<2x128xf32>
    %290 = arith.divf %288, %289 : vector<2x128xf32>
    %291 = math.tanh %285 : vector<2x128xf32>
    %292 = vector.extract_strided_slice %290 {offsets = [0, 0], sizes = [2, 32], strides = [1, 1]} : vector<2x128xf32> to vector<2x32xf32>
    %293 = vector.extract_strided_slice %290 {offsets = [0, 32], sizes = [2, 32], strides = [1, 1]} : vector<2x128xf32> to vector<2x32xf32>
    %294 = vector.extract_strided_slice %291 {offsets = [0, 64], sizes = [2, 32], strides = [1, 1]} : vector<2x128xf32> to vector<2x32xf32>
    %295 = vector.extract_strided_slice %290 {offsets = [0, 96], sizes = [2, 32], strides = [1, 1]} : vector<2x128xf32> to vector<2x32xf32>
    %296 = arith.mulf %293, %276 : vector<2x32xf32>
    %297 = arith.mulf %292, %294 : vector<2x32xf32>
    %298 = arith.addf %296, %297 : vector<2x32xf32>
    %299 = math.tanh %298 : vector<2x32xf32>
    %300 = arith.mulf %295, %299 : vector<2x32xf32>
    %c0_59 = arith.constant 0 : index
    %c5 = arith.constant 5 : index
    %c0_60 = arith.constant 0 : index
    %301 = vector.load %arg11[%c0_59, %c5, %c0_60] : memref<2x8x32xf32, #tpu.memory_space<vmem>>, vector<2x1x32xf32>
    %302 = vector.shape_cast %301 : vector<2x1x32xf32> to vector<2x32xf32>
    %303 = vector.shape_cast %300 : vector<2x32xf32> to vector<2x1x32xf32>
    tpu.vector_store %arg11[%c0_59, %c5, %c0_60], %303 {strides = array<i32>} : memref<2x8x32xf32, #tpu.memory_space<vmem>>, vector<2x1x32xf32>,
    %304 = vector.extract_strided_slice %171 {offsets = [0, 6, 0], sizes = [2, 1, 128], strides = [1, 1, 1]} : vector<2x8x128xf32> to vector<2x1x128xf32>
    %305 = vector.shape_cast %304 : vector<2x1x128xf32> to vector<2x128xf32>
    %cst_61 = arith.constant dense<0.000000e+00> : vector<2x128xf32>
    %306 = tpu.matmul %300, %165, %cst_61 {dimension_numbers = #tpu.dot_dimension_numbers<[1], [0], [0], [1], [0, 0, 1, 1], [], []>} : vector<2x32xf32>, vector<32x128xf32>, vector<2x128xf32> -> vector<2x128xf32>
    %307 = arith.addf %305, %306 : vector<2x128xf32>
    %308 = arith.negf %307 : vector<2x128xf32>
    %309 = math.exp %308 : vector<2x128xf32>
    %cst_62 = arith.constant 1.000000e+00 : f32
    %310 = vector.broadcast %cst_62 : f32 to vector<2x128xf32>
    %311 = arith.addf %310, %309 : vector<2x128xf32>
    %312 = arith.divf %310, %311 : vector<2x128xf32>
    %313 = math.tanh %307 : vector<2x128xf32>
    %314 = vector.extract_strided_slice %312 {offsets = [0, 0], sizes = [2, 32], strides = [1, 1]} : vector<2x128xf32> to vector<2x32xf32>
    %315 = vector.extract_strided_slice %312 {offsets = [0, 32], sizes = [2, 32], strides = [1, 1]} : vector<2x128xf32> to vector<2x32xf32>
    %316 = vector.extract_strided_slice %313 {offsets = [0, 64], sizes = [2, 32], strides = [1, 1]} : vector<2x128xf32> to vector<2x32xf32>
    %317 = vector.extract_strided_slice %312 {offsets = [0, 96], sizes = [2, 32], strides = [1, 1]} : vector<2x128xf32> to vector<2x32xf32>
    %318 = arith.mulf %315, %298 : vector<2x32xf32>
    %319 = arith.mulf %314, %316 : vector<2x32xf32>
    %320 = arith.addf %318, %319 : vector<2x32xf32>
    %321 = math.tanh %320 : vector<2x32xf32>
    %322 = arith.mulf %317, %321 : vector<2x32xf32>
    %c0_63 = arith.constant 0 : index
    %c6 = arith.constant 6 : index
    %c0_64 = arith.constant 0 : index
    %323 = vector.load %arg11[%c0_63, %c6, %c0_64] : memref<2x8x32xf32, #tpu.memory_space<vmem>>, vector<2x1x32xf32>
    %324 = vector.shape_cast %323 : vector<2x1x32xf32> to vector<2x32xf32>
    %325 = vector.shape_cast %322 : vector<2x32xf32> to vector<2x1x32xf32>
    tpu.vector_store %arg11[%c0_63, %c6, %c0_64], %325 {strides = array<i32>} : memref<2x8x32xf32, #tpu.memory_space<vmem>>, vector<2x1x32xf32>,
    %326 = vector.extract_strided_slice %171 {offsets = [0, 7, 0], sizes = [2, 1, 128], strides = [1, 1, 1]} : vector<2x8x128xf32> to vector<2x1x128xf32>
    %327 = vector.shape_cast %326 : vector<2x1x128xf32> to vector<2x128xf32>
    %cst_65 = arith.constant dense<0.000000e+00> : vector<2x128xf32>
    %328 = tpu.matmul %322, %165, %cst_65 {dimension_numbers = #tpu.dot_dimension_numbers<[1], [0], [0], [1], [0, 0, 1, 1], [], []>} : vector<2x32xf32>, vector<32x128xf32>, vector<2x128xf32> -> vector<2x128xf32>
    %329 = arith.addf %327, %328 : vector<2x128xf32>
    %330 = arith.negf %329 : vector<2x128xf32>
    %331 = math.exp %330 : vector<2x128xf32>
    %cst_66 = arith.constant 1.000000e+00 : f32
    %332 = vector.broadcast %cst_66 : f32 to vector<2x128xf32>
    %333 = arith.addf %332, %331 : vector<2x128xf32>
    %334 = arith.divf %332, %333 : vector<2x128xf32>
    %335 = math.tanh %329 : vector<2x128xf32>
    %336 = vector.extract_strided_slice %334 {offsets = [0, 0], sizes = [2, 32], strides = [1, 1]} : vector<2x128xf32> to vector<2x32xf32>
    %337 = vector.extract_strided_slice %334 {offsets = [0, 32], sizes = [2, 32], strides = [1, 1]} : vector<2x128xf32> to vector<2x32xf32>
    %338 = vector.extract_strided_slice %335 {offsets = [0, 64], sizes = [2, 32], strides = [1, 1]} : vector<2x128xf32> to vector<2x32xf32>
    %339 = vector.extract_strided_slice %334 {offsets = [0, 96], sizes = [2, 32], strides = [1, 1]} : vector<2x128xf32> to vector<2x32xf32>
    %340 = arith.mulf %337, %320 : vector<2x32xf32>
    %341 = arith.mulf %336, %338 : vector<2x32xf32>
    %342 = arith.addf %340, %341 : vector<2x32xf32>
    %343 = math.tanh %342 : vector<2x32xf32>
    %344 = arith.mulf %339, %343 : vector<2x32xf32>
    %c0_67 = arith.constant 0 : index
    %c7 = arith.constant 7 : index
    %c0_68 = arith.constant 0 : index
    %345 = vector.load %arg11[%c0_67, %c7, %c0_68] : memref<2x8x32xf32, #tpu.memory_space<vmem>>, vector<2x1x32xf32>
    %346 = vector.shape_cast %345 : vector<2x1x32xf32> to vector<2x32xf32>
    %347 = vector.shape_cast %344 : vector<2x32xf32> to vector<2x1x32xf32>
    tpu.vector_store %arg11[%c0_67, %c7, %c0_68], %347 {strides = array<i32>} : memref<2x8x32xf32, #tpu.memory_space<vmem>>, vector<2x1x32xf32>,
    %c0_69 = arith.constant 0 : index
    %c0_70 = arith.constant 0 : index
    %c0_71 = arith.constant 0 : index
    %348 = vector.load %arg11[%c0_69, %c0_70, %c0_71] : memref<2x8x32xf32, #tpu.memory_space<vmem>>, vector<2x8x32xf32>
    %349 = vector.shape_cast %348 : vector<2x8x32xf32> to vector<16x32xf32>
    %c0_72 = arith.constant 0 : index
    %c0_73 = arith.constant 0 : index
    %350 = vector.load %arg8[%c0_72, %c0_73] : memref<32x4xf32, #tpu.memory_space<vmem>>, vector<32x4xf32>
    %cst_74 = arith.constant dense<0.000000e+00> : vector<16x4xf32>
    %351 = tpu.matmul %349, %350, %cst_74 {dimension_numbers = #tpu.dot_dimension_numbers<[1], [0], [0], [1], [0, 0, 1, 1], [], []>} : vector<16x32xf32>, vector<32x4xf32>, vector<16x4xf32> -> vector<16x4xf32>
    %c0_75 = arith.constant 0 : index
    %c0_76 = arith.constant 0 : index
    %352 = vector.load %arg9[%c0_75, %c0_76] : memref<1x4xf32, #tpu.memory_space<vmem>>, vector<1x4xf32>
    %353 = vector.broadcast %352 : vector<1x4xf32> to vector<16x4xf32>
    %354 = arith.addf %351, %353 : vector<16x4xf32>
    %355 = vector.shape_cast %354 : vector<16x4xf32> to vector<2x8x4xf32>
    %c0_77 = arith.constant 0 : index
    %c0_78 = arith.constant 0 : index
    %c0_79 = arith.constant 0 : index
    %356 = vector.load %arg10[%c0_77, %c0_78, %c0_79] : memref<2x8x4xf32, #tpu.memory_space<vmem>>, vector<2x8x4xf32>
    tpu.vector_store %arg10[%c0_77, %c0_78, %c0_79], %355 {strides = array<i32>} : memref<2x8x4xf32, #tpu.memory_space<vmem>>, vector<2x8x4xf32>,
    return
  }
}

</mosaic_0001>

<bundles_post_ra>
// kernel: tpu_custom_call.1
= control target key start
LH: loop header
LB: loop body
LE: loop exit
PB: predicated region body
PF: predicated region fallthrough
CT: control target
= control target key end

     0   :  { %vm56_vm0 = vcmask 1043456   ;;  %vm49_vm1 = vcmask 31744   ;;  %v3236_v3 = vmov 0.0   ;;  %vm3237_vm2 = vmmov 0   ;;  %s3238_s26 = smov 64   ;;  %s3828_s2 = inlined_call_operand.vmem [shape: f32[4,128], index: 2, kind: input, shape index: {}]   ;;  %s3829_s0 = inlined_call_operand.vmem [shape: f32[2,8,4], index: 0, kind: input, shape index: {}]   ;;  %s3830_s3 = inlined_call_operand.vmem [shape: f32[32,128], index: 3, kind: input, shape index: {}]   ;;  %s3831_s4 = inlined_call_operand.vmem [shape: f32[1,128], index: 4, kind: input, shape index: {}]   ;;  %s3832_s6 = inlined_call_operand.vmem [shape: f32[32,128], index: 6, kind: input, shape index: {}]   ;;  %s3833_s5 = inlined_call_operand.vmem [shape: f32[4,128], index: 5, kind: input, shape index: {}]   ;;  %s3834_s1 = inlined_call_operand.vmem [shape: f32[2,8,4], index: 1, kind: input, shape index: {}]   ;;  %s3835_s7 = inlined_call_operand.vmem [shape: f32[1,128], index: 7, kind: input, shape index: {}]   ;;  %s3836_s8 = inlined_call_operand.vmem [shape: f32[32,4], index: 8, kind: input, shape index: {}]   ;;  %s3837_s9 = inlined_call_operand.vmem [shape: f32[1,4], index: 9, kind: input, shape index: {}]   ;;  %s3838_s10 = inlined_call_operand.vmem [shape: f32[2,8,4], index: 10, kind: output, shape index: {}]  }
   0x1   :  { %v37_v0 = vld [vmem:[%s3828_s2] sm:$0xf]  ;;  %v36_v2 = vld [vmem:[%s3829_s0 + $0x8] sm:$0xff]  ;;  %2795 = vmatprep.subr.mxu0 %v3236_v3  ;;  %2803 = vmatprep.mubr.msk.f32.mxu0 %vm3237_vm2, %v3236_v3  ;;  %v3312_v4 = vld [vmem:[%s3830_s3 + $0x18] sm:$0xff]  ;;  %vm266_vm3 = vcmask 1041409   ;;  %vm135_vm4 = vcmask 261120  }
   0x2   :  { %v35_v1 = vld [vmem:[%s3829_s0] sm:$0xff]  ;;  %2779 = vmatprep.subr.msk.mxu1 %vm56_vm0, %v37_v0  ;;  %2796 = vmatpush3.msra.mxu0 %v3312_v4  ;;  %v3321_v5 = vld [vmem:[%s3830_s3 + $0x10] sm:$0xff]  ;;  %v3330_v6 = vld [vmem:[%s3830_s3 + $0x8] sm:$0xff]  ;;  %vm1486_vm5 = vcmask 253952   ;;  %vm1633_vm6 = vcmask 254977   ;;  %vm1781_vm7 = vcmask 256002  }
   0x3   :  { %2781 = vmatprep.mubr.msk.f32.mxu1 %vm49_vm1, %v35_v1  ;;  %2780 = vmatpush3.msk.msra.mxu1 %vm56_vm0, %v37_v0  ;;  %v3339_v7 = vld [vmem:[%s3830_s3] sm:$0xff]  ;;  %vm1930_vm8 = vcmask 257027   ;;  %vm2079_vm9 = vcmask 258052   ;;  %vm2228_vm10 = vcmask 259077   ;;  %vm2377_vm11 = vcmask 260102  }
   0x4   :  { %2782 = vmatmul.mubr.msk.f32.vlgmr.msra.gmra.mxu1 %vm49_vm1, %v36_v2  ;;  %2784 = vmatprep.subr.mxu1 %v3236_v3  ;;  %v2629_v9 = vld [vmem:[%s3831_s4] ss:$0 sm:$0xff]  ;;  %s3239_s4 = smov 32   ;;  %vm2526_vm12 = vcmask 261127  }
   0x5   :  { %2785 = vmatpush3.msra.mxu1 %v3312_v4  ;;  %2792 = vmatprep.mubr.msk.f32.mxu1 %vm3237_vm2, %v3236_v3 }
   0x6   :  { %2786 = vmatprep.subr.mxu1 %v3236_v3  ;;  %2797 = vmatprep.subr.mxu0 %v3236_v3 }
   0x7   :  { %2787 = vmatpush3.msra.mxu1 %v3321_v5  ;;  %2798 = vmatpush3.msra.mxu0 %v3321_v5 }
   0x8   :  { %2788 = vmatprep.subr.mxu1 %v3236_v3  ;;  %2799 = vmatprep.subr.mxu0 %v3236_v3 }
   0x9   :  { %2789 = vmatpush3.msra.mxu1 %v3330_v6  ;;  %2800 = vmatpush3.msra.mxu0 %v3330_v6 }
   0xa   :  { %2790 = vmatprep.subr.mxu1 %v3236_v3  ;;  %2801 = vmatprep.subr.mxu0 %v3236_v3 }
   0xb   :  { %2791 = vmatpush3.msra.mxu1 %v3339_v7  ;;  %2802 = vmatpush3.msra.mxu0 %v3339_v7 }
   0xc   :  { %2793 = vmatmul.mubr.f32.vlgmr.msra.gmra.mxu1 %v3236_v3  ;;  %2806 = vmatprep.subr.mxu1 %v3236_v3 }
   0xd   :  { %2807 = vmatpush3.msra.mxu1 %v3312_v4  ;;  %2814 = vmatprep.mubr.msk.f32.mxu1 %vm3237_vm2, %v3236_v3 }
   0xe   :  { %2808 = vmatprep.subr.mxu1 %v3236_v3  ;;  %2817 = vmatprep.subr.mxu0 %v3236_v3 }
   0xf   :  { %2809 = vmatpush3.msra.mxu1 %v3321_v5 }
  0x10   :  { %2810 = vmatprep.subr.mxu1 %v3236_v3 }
  0x11   :  { %2811 = vmatpush3.msra.mxu1 %v3330_v6 }
  0x12   :  { %2812 = vmatprep.subr.mxu1 %v3236_v3 }
  0x13   :  { %2813 = vmatpush3.msra.mxu1 %v3339_v7 }
  0x14   :  { %2828 = vmatprep.subr.mxu1 %v3236_v3 }
  0xc4   :  { %v2783_v8 = vpop.f32.mrf.mxu1 }
  0xc5   :  { %v3364_v12 = vadd.f32 %v2783_v8, %v2629_v9 }
  0xc6   :  { %v126_v10 = vpop.f32.mrf.mxu1 }
  0xc7   :  { %v3367_v16 = vadd.f32 %v2629_v9, %v126_v10 }
  0xcc   :  { %v205_v11 = vpop.f32.mrf.mxu1 }
  0xcd   :  { %v210_v13 = vrot.slane %v205_v11, 1  ;;  %v213_v17 = vadd.f32 %v205_v11, %v3367_v16 }
  0xce   :  { %v2794_v14 = vpop.f32.mrf.mxu1 }
  0xcf   :  { %v214_v15 = vadd.f32 %v210_v13, %v3364_v12  ;;  %v2633_v21 = vmul.f32 -1.442695, %v213_v17 }
  0xd1   :  { %2980 = vtanh.f32 %v214_v15  ;;  %v2634_v20 = vmul.f32 -1.442695, %v214_v15 }
  0xd2   :  { %2982 = vtanh.f32 %v213_v17 }
  0xd3   :  { %2984 = vpow2.f32 %v2634_v20 }
  0xd4   :  { %2986 = vpow2.f32 %v2633_v21 }
  0xde   :  { %v2981_v18 = vpop.eup %2980 }
  0xdf   :  { %235 = vrot.lane.b32.xlu0 %v2981_v18, %s3238_s26  ;;  %v2983_v19 = vpop.eup %2982 }
  0xe0   :  { %v2985_v22 = vpop.eup %2984 }
  0xe1   :  { %v222_v23 = vadd.f32 1.0, %v2985_v22  ;;  %v2987_v24 = vpop.eup %2986 }
  0xe2   :  { %v221_v25 = vadd.f32 1.0, %v2987_v24 }
  0xe3   :  { %233 = vrot.lane.b32.xlu0 %v2983_v19, %s3238_s26  ;;  %2988 = vrcp.f32 %v222_v23 }
  0xe4   :  { %2990 = vrcp.f32 %v221_v25 }
  0xf0   :  { %v2989_v26 = vpop.eup %2988 }
  0xf1   :  { %v2991_v29 = vpop.eup %2990  ;;  %v230_v32 = vmul.f32 0.0, %v2989_v26 }
  0xf2   :  { %v229_v35 = vmul.f32 0.0, %v2991_v29 }
 0x151   :  { %v236_v27 = vpop.permute.xlu0 %235 }
 0x152   :  { %v240_v28 = vmul.f32 %v2989_v26, %v236_v27 }
 0x154   :  { %245 = vrot.lane.b32.xlu1 %v240_v28, %s3239_s4 }
 0x155   :  { %v234_v30 = vpop.permute.xlu0 %233 }
 0x156   :  { %v239_v31 = vmul.f32 %v2991_v29, %v234_v30 }
 0x158   :  { %243 = vrot.lane.b32.xlu1 %v239_v31, %s3239_s4 }
 0x1c6   :  { %v246_v33 = vpop.permute.xlu1 %245 }
 0x1c7   :  { %v250_v34 = vadd.f32 %v246_v33, %v230_v32 }
 0x1c9   :  { %2992 = vtanh.f32 %v250_v34  ;;  %v365_v2 = vrot.slane %v250_v34, 7 }
 0x1ca   :  { %v244_v36 = vpop.permute.xlu1 %243 }
 0x1cb   :  { %v249_v37 = vadd.f32 %v244_v36, %v229_v35 }
 0x1cd   :  { %2994 = vtanh.f32 %v249_v37  ;;  %v364_v9 = vrot.slane %v249_v37, 7 }
 0x1d6   :  { %v2993_v38 = vpop.eup %2992 }
 0x1d7   :  { %257 = vrot.lane.b32.xlu0 %v2993_v38, %s3238_s26 }
 0x1da   :  { %v2995_v39 = vpop.eup %2994 }
 0x1db   :  { %255 = vrot.lane.b32.xlu1 %v2995_v39, %s3238_s26 }
 0x249   :  { %v258_v40 = vpop.permute.xlu0 %257 }
 0x24a   :  { %v262_v41 = vmul.f32 %v2989_v26, %v258_v40 }
 0x24c   :  { %v265_v43 = vrot.slane %v262_v41, 7 }
 0x24d   :  { %v256_v42 = vpop.permute.xlu1 %255 }
 0x24e   :  { %v261_v44 = vmul.f32 %v2991_v29, %v256_v42 }
 0x250   :  { %v267_v45 = vsel %vm266_vm3, %v265_v43, %v261_v44 }
 0x251   :  { %268 = vrot.lane.b32.xlu0 %v267_v45, %s3239_s4 }
 0x2c3   :  { %v269_v46 = vpop.permute.xlu0 %268 }
 0x2c4   :  { %2804 = vmatmul.mubr.msk.f32.vlgmr.msra.gmra.mxu0 %vm135_vm4, %v269_v46 }
 0x2c5   :  { %2818 = vmatpush3.msra.mxu0 %v3312_v4  ;;  %2825 = vmatprep.mubr.msk.f32.mxu0 %vm3237_vm2, %v3236_v3 }
 0x2c6   :  { %2819 = vmatprep.subr.mxu0 %v3236_v3 }
 0x2c7   :  { %2820 = vmatpush3.msra.mxu0 %v3321_v5 }
 0x2c8   :  { %2821 = vmatprep.subr.mxu0 %v3236_v3 }
 0x2c9   :  { %2822 = vmatpush3.msra.mxu0 %v3330_v6 }
 0x2ca   :  { %2823 = vmatprep.subr.mxu0 %v3236_v3 }
 0x2cb   :  { %2824 = vmatpush3.msra.mxu0 %v3339_v7 }
 0x2cc   :  { %2839 = vmatprep.subr.mxu0 %v3236_v3 }
 0x384   :  { %v338_v47 = vpop.f32.mrf.mxu0 }
 0x385   :  { %v343_v48 = vrot.slane %v338_v47, 7  ;;  %v347_v49 = vadd.f32 %v338_v47, %v3364_v12 }
 0x386   :  { %v2805_v50 = vpop.f32.mrf.mxu0 }
 0x387   :  { %v346_v51 = vadd.f32 %v343_v48, %v3367_v16  ;;  %2996 = vtanh.f32 %v347_v49  ;;  %v2637_v54 = vmul.f32 -1.442695, %v347_v49 }
 0x389   :  { %2998 = vtanh.f32 %v346_v51  ;;  %v2636_v55 = vmul.f32 -1.442695, %v346_v51 }
 0x38a   :  { %3000 = vpow2.f32 %v2637_v54 }
 0x38b   :  { %3002 = vpow2.f32 %v2636_v55 }
 0x394   :  { %v2997_v52 = vpop.eup %2996 }
 0x395   :  { %374 = vrot.lane.b32.xlu0 %v2997_v52, %s3238_s26 }
 0x396   :  { %v2999_v53 = vpop.eup %2998 }
 0x397   :  { %372 = vrot.lane.b32.xlu1 %v2999_v53, %s3238_s26  ;;  %v3001_v56 = vpop.eup %3000 }
 0x398   :  { %v3003_v57 = vpop.eup %3002  ;;  %v355_v58 = vadd.f32 1.0, %v3001_v56 }
 0x399   :  { %v354_v59 = vadd.f32 1.0, %v3003_v57 }
 0x39a   :  { %3004 = vrcp.f32 %v355_v58 }
 0x39b   :  { %3006 = vrcp.f32 %v354_v59 }
 0x3a7   :  { %v3005_v60 = vpop.eup %3004 }
 0x3a8   :  { %v3007_v63 = vpop.eup %3006  ;;  %v369_v8 = vmul.f32 %v3005_v60, %v365_v2 }
 0x3a9   :  { %v368_v13 = vmul.f32 %v3007_v63, %v364_v9 }
 0x407   :  { %v375_v61 = vpop.permute.xlu0 %374 }
 0x408   :  { %v379_v62 = vmul.f32 %v3005_v60, %v375_v61 }
 0x409   :  { %v373_v0 = vpop.permute.xlu1 %372 }
 0x40a   :  { %384 = vrot.lane.b32.xlu0 %v379_v62, %s3239_s4  ;;  %v378_v1 = vmul.f32 %v3007_v63, %v373_v0 }
 0x40c   :  { %382 = vrot.lane.b32.xlu1 %v378_v1, %s3239_s4 }
 0x47c   :  { %v385_v10 = vpop.permute.xlu0 %384 }
 0x47d   :  { %v389_v11 = vadd.f32 %v385_v10, %v369_v8 }
 0x47e   :  { %v383_v14 = vpop.permute.xlu1 %382 }
 0x47f   :  { %3008 = vtanh.f32 %v389_v11  ;;  %v388_v15 = vadd.f32 %v383_v14, %v368_v13  ;;  %v504_v47 = vrot.slane %v389_v11, 7 }
 0x481   :  { %3010 = vtanh.f32 %v388_v15  ;;  %v503_v46 = vrot.slane %v388_v15, 7 }
 0x48c   :  { %v3009_v17 = vpop.eup %3008 }
 0x48d   :  { %396 = vrot.lane.b32.xlu0 %v3009_v17, %s3238_s26 }
 0x48e   :  { %v3011_v18 = vpop.eup %3010 }
 0x48f   :  { %394 = vrot.lane.b32.xlu1 %v3011_v18, %s3238_s26 }
 0x4ff   :  { %v397_v19 = vpop.permute.xlu0 %396 }
 0x500   :  { %v401_v22 = vmul.f32 %v3005_v60, %v397_v19 }
 0x501   :  { %v395_v20 = vpop.permute.xlu1 %394 }
 0x502   :  { %v400_v21 = vmul.f32 %v3007_v63, %v395_v20 }
 0x504   :  { %v404_v23 = vrot.slane %v400_v21, 1 }
 0x506   :  { %v405_v24 = vsel %vm266_vm3, %v401_v22, %v404_v23 }
 0x507   :  { %406 = vrot.lane.b32.xlu1 %v405_v24, %s3239_s4 }
 0x579   :  { %v407_v25 = vpop.permute.xlu1 %406 }
 0x57a   :  { %2815 = vmatmul.mubr.msk.f32.vlgmr.msra.gmra.mxu1 %vm135_vm4, %v407_v25 }
 0x57b   :  { %2829 = vmatpush3.msra.mxu1 %v3312_v4  ;;  %2836 = vmatprep.mubr.msk.f32.mxu1 %vm3237_vm2, %v3236_v3 }
 0x57c   :  { %2830 = vmatprep.subr.mxu1 %v3236_v3 }
 0x57d   :  { %2831 = vmatpush3.msra.mxu1 %v3321_v5 }
 0x57e   :  { %2832 = vmatprep.subr.mxu1 %v3236_v3 }
 0x57f   :  { %2833 = vmatpush3.msra.mxu1 %v3330_v6 }
 0x580   :  { %2834 = vmatprep.subr.mxu1 %v3236_v3 }
 0x581   :  { %2835 = vmatpush3.msra.mxu1 %v3339_v7 }
 0x582   :  { %2850 = vmatprep.subr.mxu1 %v3236_v3 }
 0x63a   :  { %v476_v26 = vpop.f32.mrf.mxu1 }
 0x63b   :  { %v481_v27 = vrot.slane %v476_v26, 6  ;;  %v482_v28 = vrot.slane %v476_v26, 7 }
 0x63c   :  { %v2816_v29 = vpop.f32.mrf.mxu1 }
 0x63d   :  { %v485_v30 = vadd.f32 %v481_v27, %v3367_v16  ;;  %v486_v31 = vadd.f32 %v482_v28, %v3364_v12 }
 0x63f   :  { %3012 = vtanh.f32 %v485_v30  ;;  %v2639_v34 = vmul.f32 -1.442695, %v485_v30  ;;  %v2640_v35 = vmul.f32 -1.442695, %v486_v31 }
 0x640   :  { %3014 = vtanh.f32 %v486_v31 }
 0x641   :  { %3016 = vpow2.f32 %v2639_v34 }
 0x642   :  { %3018 = vpow2.f32 %v2640_v35 }
 0x64c   :  { %v3013_v32 = vpop.eup %3012 }
 0x64d   :  { %v3015_v33 = vpop.eup %3014  ;;  %511 = vrot.lane.b32.xlu0 %v3013_v32, %s3238_s26 }
 0x64e   :  { %513 = vrot.lane.b32.xlu1 %v3015_v33, %s3238_s26  ;;  %v3017_v36 = vpop.eup %3016 }
 0x64f   :  { %v3019_v37 = vpop.eup %3018  ;;  %v493_v38 = vadd.f32 1.0, %v3017_v36 }
 0x650   :  { %v494_v39 = vadd.f32 1.0, %v3019_v37 }
 0x651   :  { %3020 = vrcp.f32 %v493_v38 }
 0x652   :  { %3022 = vrcp.f32 %v494_v39 }
 0x65e   :  { %v3021_v40 = vpop.eup %3020 }
 0x65f   :  { %v3023_v42 = vpop.eup %3022  ;;  %v507_v48 = vmul.f32 %v3021_v40, %v503_v46 }
 0x660   :  { %v508_v49 = vmul.f32 %v3023_v42, %v504_v47 }
 0x6bf   :  { %v512_v41 = vpop.permute.xlu0 %511 }
 0x6c0   :  { %v514_v43 = vpop.permute.xlu1 %513  ;;  %v517_v44 = vmul.f32 %v3021_v40, %v512_v41 }
 0x6c1   :  { %v518_v45 = vmul.f32 %v3023_v42, %v514_v43 }
 0x6c2   :  { %521 = vrot.lane.b32.xlu0 %v517_v44, %s3239_s4 }
 0x6c3   :  { %523 = vrot.lane.b32.xlu1 %v518_v45, %s3239_s4 }
 0x734   :  { %v522_v50 = vpop.permute.xlu0 %521 }
 0x735   :  { %v524_v51 = vpop.permute.xlu1 %523  ;;  %v527_v52 = vadd.f32 %v522_v50, %v507_v48 }
 0x736   :  { %v528_v53 = vadd.f32 %v524_v51, %v508_v49 }
 0x737   :  { %3024 = vtanh.f32 %v527_v52  ;;  %v643_v27 = vrot.slane %v527_v52, 7 }
 0x738   :  { %3026 = vtanh.f32 %v528_v53  ;;  %v644_v28 = vrot.slane %v528_v53, 7 }
 0x744   :  { %v3025_v54 = vpop.eup %3024 }
 0x745   :  { %v3027_v55 = vpop.eup %3026  ;;  %533 = vrot.lane.b32.xlu0 %v3025_v54, %s3238_s26 }
 0x746   :  { %535 = vrot.lane.b32.xlu1 %v3027_v55, %s3238_s26 }
 0x7b7   :  { %v534_v56 = vpop.permute.xlu0 %533 }
 0x7b8   :  { %v536_v57 = vpop.permute.xlu1 %535  ;;  %v539_v58 = vmul.f32 %v3021_v40, %v534_v56 }
 0x7b9   :  { %v540_v59 = vmul.f32 %v3023_v42, %v536_v57 }
 0x7ba   :  { %v543_v60 = vrot.slane %v539_v58, 2 }
 0x7bb   :  { %v544_v61 = vrot.slane %v540_v59, 1 }
 0x7bd   :  { %v545_v62 = vsel %vm266_vm3, %v544_v61, %v543_v60 }
 0x7be   :  { %546 = vrot.lane.b32.xlu0 %v545_v62, %s3239_s4 }
 0x830   :  { %v547_v63 = vpop.permute.xlu0 %546 }
 0x831   :  { %2826 = vmatmul.mubr.msk.f32.vlgmr.msra.gmra.mxu0 %vm135_vm4, %v547_v63 }
 0x832   :  { %2840 = vmatpush3.msra.mxu0 %v3312_v4  ;;  %2847 = vmatprep.mubr.msk.f32.mxu0 %vm3237_vm2, %v3236_v3 }
 0x833   :  { %2841 = vmatprep.subr.mxu0 %v3236_v3 }
 0x834   :  { %2842 = vmatpush3.msra.mxu0 %v3321_v5 }
 0x835   :  { %2843 = vmatprep.subr.mxu0 %v3236_v3 }
 0x836   :  { %2844 = vmatpush3.msra.mxu0 %v3330_v6 }
 0x837   :  { %2845 = vmatprep.subr.mxu0 %v3236_v3 }
 0x838   :  { %2846 = vmatpush3.msra.mxu0 %v3339_v7 }
 0x839   :  { %2861 = vmatprep.subr.mxu0 %v3236_v3 }
 0x8f1   :  { %v616_v0 = vpop.f32.mrf.mxu0 }
 0x8f2   :  { %v621_v1 = vrot.slane %v616_v0, 5  ;;  %v622_v2 = vrot.slane %v616_v0, 6 }
 0x8f3   :  { %v2827_v8 = vpop.f32.mrf.mxu0 }
 0x8f4   :  { %v625_v9 = vadd.f32 %v621_v1, %v3367_v16  ;;  %v626_v10 = vadd.f32 %v622_v2, %v3364_v12 }
 0x8f6   :  { %3028 = vtanh.f32 %v625_v9  ;;  %v2642_v14 = vmul.f32 -1.442695, %v625_v9  ;;  %v2643_v15 = vmul.f32 -1.442695, %v626_v10 }
 0x8f7   :  { %3030 = vtanh.f32 %v626_v10 }
 0x8f8   :  { %3032 = vpow2.f32 %v2642_v14 }
 0x8f9   :  { %3034 = vpow2.f32 %v2643_v15 }
 0x903   :  { %v3029_v11 = vpop.eup %3028 }
 0x904   :  { %v3031_v13 = vpop.eup %3030  ;;  %651 = vrot.lane.b32.xlu1 %v3029_v11, %s3238_s26 }
 0x905   :  { %653 = vrot.lane.b32.xlu0 %v3031_v13, %s3238_s26  ;;  %v3033_v17 = vpop.eup %3032 }
 0x906   :  { %v3035_v18 = vpop.eup %3034  ;;  %v633_v19 = vadd.f32 1.0, %v3033_v17 }
 0x907   :  { %v634_v20 = vadd.f32 1.0, %v3035_v18 }
 0x908   :  { %3036 = vrcp.f32 %v633_v19 }
 0x909   :  { %3038 = vrcp.f32 %v634_v20 }
 0x915   :  { %v3037_v21 = vpop.eup %3036 }
 0x916   :  { %v3039_v23 = vpop.eup %3038  ;;  %v647_v29 = vmul.f32 %v3037_v21, %v643_v27 }
 0x917   :  { %v648_v30 = vmul.f32 %v3039_v23, %v644_v28 }
 0x976   :  { %v652_v22 = vpop.permute.xlu1 %651 }
 0x977   :  { %v654_v24 = vpop.permute.xlu0 %653  ;;  %v657_v25 = vmul.f32 %v3037_v21, %v652_v22 }
 0x978   :  { %v658_v26 = vmul.f32 %v3039_v23, %v654_v24 }
 0x979   :  { %661 = vrot.lane.b32.xlu1 %v657_v25, %s3239_s4 }
 0x97a   :  { %663 = vrot.lane.b32.xlu0 %v658_v26, %s3239_s4 }
 0x9eb   :  { %v662_v31 = vpop.permute.xlu1 %661 }
 0x9ec   :  { %v664_v32 = vpop.permute.xlu0 %663  ;;  %v667_v33 = vadd.f32 %v662_v31, %v647_v29 }
 0x9ed   :  { %v668_v34 = vadd.f32 %v664_v32, %v648_v30 }
 0x9ee   :  { %3040 = vtanh.f32 %v667_v33  ;;  %v783_v1 = vrot.slane %v667_v33, 7 }
 0x9ef   :  { %3042 = vtanh.f32 %v668_v34  ;;  %v784_v2 = vrot.slane %v668_v34, 7 }
 0x9fb   :  { %v3041_v35 = vpop.eup %3040 }
 0x9fc   :  { %v3043_v36 = vpop.eup %3042  ;;  %673 = vrot.lane.b32.xlu1 %v3041_v35, %s3238_s26 }
 0x9fd   :  { %675 = vrot.lane.b32.xlu0 %v3043_v36, %s3238_s26 }
 0xa6e   :  { %v674_v37 = vpop.permute.xlu1 %673 }
 0xa6f   :  { %v676_v38 = vpop.permute.xlu0 %675  ;;  %v679_v39 = vmul.f32 %v3037_v21, %v674_v37 }
 0xa70   :  { %v680_v40 = vmul.f32 %v3039_v23, %v676_v38 }
 0xa71   :  { %v683_v41 = vrot.slane %v679_v39, 3 }
 0xa72   :  { %v684_v42 = vrot.slane %v680_v40, 2 }
 0xa74   :  { %v685_v43 = vsel %vm266_vm3, %v684_v42, %v683_v41 }
 0xa75   :  { %686 = vrot.lane.b32.xlu1 %v685_v43, %s3239_s4 }
 0xae7   :  { %v687_v44 = vpop.permute.xlu1 %686 }
 0xae8   :  { %2837 = vmatmul.mubr.msk.f32.vlgmr.msra.gmra.mxu1 %vm135_vm4, %v687_v44 }
 0xae9   :  { %2851 = vmatpush3.msra.mxu1 %v3312_v4  ;;  %2858 = vmatprep.mubr.msk.f32.mxu1 %vm3237_vm2, %v3236_v3 }
 0xaea   :  { %2852 = vmatprep.subr.mxu1 %v3236_v3 }
 0xaeb   :  { %2853 = vmatpush3.msra.mxu1 %v3321_v5 }
 0xaec   :  { %2854 = vmatprep.subr.mxu1 %v3236_v3 }
 0xaed   :  { %2855 = vmatpush3.msra.mxu1 %v3330_v6 }
 0xaee   :  { %2856 = vmatprep.subr.mxu1 %v3236_v3 }
 0xaef   :  { %2857 = vmatpush3.msra.mxu1 %v3339_v7 }
 0xba8   :  { %v756_v45 = vpop.f32.mrf.mxu1 }
 0xba9   :  { %v761_v46 = vrot.slane %v756_v45, 4  ;;  %v762_v47 = vrot.slane %v756_v45, 5 }
 0xbaa   :  { %v2838_v48 = vpop.f32.mrf.mxu1 }
 0xbab   :  { %v765_v49 = vadd.f32 %v761_v46, %v3367_v16  ;;  %v766_v50 = vadd.f32 %v762_v47, %v3364_v12 }
 0xbad   :  { %3044 = vtanh.f32 %v765_v49  ;;  %v2645_v53 = vmul.f32 -1.442695, %v765_v49  ;;  %v2646_v54 = vmul.f32 -1.442695, %v766_v50 }
 0xbae   :  { %3046 = vtanh.f32 %v766_v50 }
 0xbaf   :  { %3048 = vpow2.f32 %v2645_v53 }
 0xbb0   :  { %3050 = vpow2.f32 %v2646_v54 }
 0xbba   :  { %v3045_v51 = vpop.eup %3044 }
 0xbbb   :  { %v3047_v52 = vpop.eup %3046  ;;  %791 = vrot.lane.b32.xlu0 %v3045_v51, %s3238_s26 }
 0xbbc   :  { %793 = vrot.lane.b32.xlu1 %v3047_v52, %s3238_s26  ;;  %v3049_v55 = vpop.eup %3048 }
 0xbbd   :  { %v3051_v56 = vpop.eup %3050  ;;  %v773_v57 = vadd.f32 1.0, %v3049_v55 }
 0xbbe   :  { %v774_v58 = vadd.f32 1.0, %v3051_v56 }
 0xbbf   :  { %3052 = vrcp.f32 %v773_v57 }
 0xbc0   :  { %3054 = vrcp.f32 %v774_v58 }
 0xbcc   :  { %v3053_v59 = vpop.eup %3052 }
 0xbcd   :  { %v3055_v61 = vpop.eup %3054  ;;  %v787_v8 = vmul.f32 %v3053_v59, %v783_v1 }
 0xbce   :  { %v788_v9 = vmul.f32 %v3055_v61, %v784_v2 }
 0xc2d   :  { %v792_v60 = vpop.permute.xlu0 %791 }
 0xc2e   :  { %v794_v62 = vpop.permute.xlu1 %793  ;;  %v797_v63 = vmul.f32 %v3053_v59, %v792_v60 }
 0xc2f   :  { %v798_v0 = vmul.f32 %v3055_v61, %v794_v62 }
 0xc30   :  { %801 = vrot.lane.b32.xlu0 %v797_v63, %s3239_s4 }
 0xc31   :  { %803 = vrot.lane.b32.xlu1 %v798_v0, %s3239_s4 }
 0xca2   :  { %v802_v10 = vpop.permute.xlu0 %801 }
 0xca3   :  { %v804_v11 = vpop.permute.xlu1 %803  ;;  %v807_v13 = vadd.f32 %v802_v10, %v787_v8 }
 0xca4   :  { %v808_v14 = vadd.f32 %v804_v11, %v788_v9 }
 0xca5   :  { %3056 = vtanh.f32 %v807_v13  ;;  %v923_v42 = vrot.slane %v807_v13, 7 }
 0xca6   :  { %3058 = vtanh.f32 %v808_v14  ;;  %v924_v43 = vrot.slane %v808_v14, 7 }
 0xcb2   :  { %v3057_v15 = vpop.eup %3056 }
 0xcb3   :  { %v3059_v17 = vpop.eup %3058  ;;  %813 = vrot.lane.b32.xlu0 %v3057_v15, %s3238_s26 }
 0xcb4   :  { %815 = vrot.lane.b32.xlu1 %v3059_v17, %s3238_s26 }
 0xd25   :  { %v814_v18 = vpop.permute.xlu0 %813 }
 0xd26   :  { %v816_v19 = vpop.permute.xlu1 %815  ;;  %v819_v20 = vmul.f32 %v3053_v59, %v814_v18 }
 0xd27   :  { %v820_v21 = vmul.f32 %v3055_v61, %v816_v19 }
 0xd28   :  { %v823_v22 = vrot.slane %v819_v20, 4 }
 0xd29   :  { %v824_v23 = vrot.slane %v820_v21, 3 }
 0xd2b   :  { %v825_v24 = vsel %vm266_vm3, %v824_v23, %v823_v22 }
 0xd2c   :  { %826 = vrot.lane.b32.xlu0 %v825_v24, %s3239_s4 }
 0xd9e   :  { %v827_v25 = vpop.permute.xlu0 %826 }
 0xd9f   :  { %2848 = vmatmul.mubr.msk.f32.vlgmr.msra.gmra.mxu0 %vm135_vm4, %v827_v25 }
 0xda0   :  { %2862 = vmatpush3.msra.mxu0 %v3312_v4  ;;  %2869 = vmatprep.mubr.msk.f32.mxu0 %vm3237_vm2, %v3236_v3 }
 0xda1   :  { %2863 = vmatprep.subr.mxu0 %v3236_v3 }
 0xda2   :  { %2864 = vmatpush3.msra.mxu0 %v3321_v5 }
 0xda3   :  { %2865 = vmatprep.subr.mxu0 %v3236_v3 }
 0xda4   :  { %2866 = vmatpush3.msra.mxu0 %v3330_v6 }
 0xda5   :  { %2867 = vmatprep.subr.mxu0 %v3236_v3 }
 0xda6   :  { %2868 = vmatpush3.msra.mxu0 %v3339_v7 }
 0xda7   :  { %2877 = vmatprep.subr.mxu0 %v3236_v3 }
 0xe5f   :  { %v896_v26 = vpop.f32.mrf.mxu0 }
 0xe60   :  { %v901_v27 = vrot.slane %v896_v26, 3  ;;  %v902_v4 = vrot.slane %v896_v26, 4 }
 0xe61   :  { %v2849_v28 = vpop.f32.mrf.mxu0 }
 0xe62   :  { %v905_v29 = vadd.f32 %v901_v27, %v3367_v16  ;;  %v906_v30 = vadd.f32 %v902_v4, %v3364_v12 }
 0xe64   :  { %3060 = vtanh.f32 %v905_v29  ;;  %v2648_v6 = vmul.f32 -1.442695, %v905_v29  ;;  %v2649_v7 = vmul.f32 -1.442695, %v906_v30 }
 0xe65   :  { %3062 = vtanh.f32 %v906_v30 }
 0xe66   :  { %3064 = vpow2.f32 %v2648_v6 }
 0xe67   :  { %3066 = vpow2.f32 %v2649_v7 }
 0xe71   :  { %v3061_v5 = vpop.eup %3060 }
 0xe72   :  { %v3063_v31 = vpop.eup %3062  ;;  %931 = vrot.lane.b32.xlu1 %v3061_v5, %s3238_s26 }
 0xe73   :  { %933 = vrot.lane.b32.xlu0 %v3063_v31, %s3238_s26  ;;  %v3065_v32 = vpop.eup %3064 }
 0xe74   :  { %v3067_v33 = vpop.eup %3066  ;;  %v913_v34 = vadd.f32 1.0, %v3065_v32 }
 0xe75   :  { %v914_v35 = vadd.f32 1.0, %v3067_v33 }
 0xe76   :  { %3068 = vrcp.f32 %v913_v34 }
 0xe77   :  { %3070 = vrcp.f32 %v914_v35 }
 0xe83   :  { %v3069_v36 = vpop.eup %3068 }
 0xe84   :  { %v3071_v38 = vpop.eup %3070  ;;  %v927_v44 = vmul.f32 %v3069_v36, %v923_v42 }
 0xe85   :  { %v928_v45 = vmul.f32 %v3071_v38, %v924_v43 }
 0xee4   :  { %v932_v37 = vpop.permute.xlu1 %931 }
 0xee5   :  { %v934_v39 = vpop.permute.xlu0 %933  ;;  %v937_v40 = vmul.f32 %v3069_v36, %v932_v37 }
 0xee6   :  { %v938_v41 = vmul.f32 %v3071_v38, %v934_v39 }
 0xee7   :  { %941 = vrot.lane.b32.xlu1 %v937_v40, %s3239_s4 }
 0xee8   :  { %943 = vrot.lane.b32.xlu0 %v938_v41, %s3239_s4 }
 0xf59   :  { %v942_v46 = vpop.permute.xlu1 %941 }
 0xf5a   :  { %v944_v47 = vpop.permute.xlu0 %943  ;;  %v947_v48 = vadd.f32 %v942_v46, %v927_v44 }
 0xf5b   :  { %v948_v49 = vadd.f32 %v944_v47, %v928_v45 }
 0xf5c   :  { %3072 = vtanh.f32 %v947_v48  ;;  %v1063_v23 = vrot.slane %v947_v48, 7 }
 0xf5d   :  { %3074 = vtanh.f32 %v948_v49  ;;  %v1064_v24 = vrot.slane %v948_v49, 7 }
 0xf69   :  { %v3073_v50 = vpop.eup %3072 }
 0xf6a   :  { %v3075_v51 = vpop.eup %3074  ;;  %953 = vrot.lane.b32.xlu1 %v3073_v50, %s3238_s26 }
 0xf6b   :  { %955 = vrot.lane.b32.xlu0 %v3075_v51, %s3238_s26 }
 0xfdc   :  { %v954_v52 = vpop.permute.xlu1 %953 }
 0xfdd   :  { %v956_v53 = vpop.permute.xlu0 %955  ;;  %v959_v54 = vmul.f32 %v3069_v36, %v954_v52 }
 0xfde   :  { %v960_v55 = vmul.f32 %v3071_v38, %v956_v53 }
 0xfdf   :  { %v963_v56 = vrot.slane %v959_v54, 5 }
 0xfe0   :  { %v964_v57 = vrot.slane %v960_v55, 4 }
 0xfe2   :  { %v965_v58 = vsel %vm266_vm3, %v964_v57, %v963_v56 }
 0xfe3   :  { %966 = vrot.lane.b32.xlu1 %v965_v58, %s3239_s4 }
0x1055   :  { %v967_v59 = vpop.permute.xlu1 %966 }
0x1056   :  { %2859 = vmatmul.mubr.msk.f32.vlgmr.msra.gmra.mxu1 %vm135_vm4, %v967_v59 }
0x1116   :  { %v1036_v60 = vpop.f32.mrf.mxu1 }
0x1117   :  { %v1041_v61 = vrot.slane %v1036_v60, 2  ;;  %v1042_v62 = vrot.slane %v1036_v60, 3 }
0x1118   :  { %v2860_v63 = vpop.f32.mrf.mxu1 }
0x1119   :  { %v1045_v0 = vadd.f32 %v1041_v61, %v3367_v16  ;;  %v1046_v1 = vadd.f32 %v1042_v62, %v3364_v12  ;;  %v3511_v63 = vld [vmem:[%s3832_s6 + $0x18] sm:$0xff] }
0x111b   :  { %3076 = vtanh.f32 %v1045_v0  ;;  %v2651_v9 = vmul.f32 -1.442695, %v1045_v0  ;;  %v2652_v10 = vmul.f32 -1.442695, %v1046_v1  ;;  %v1243_v0 = vld [vmem:[%s3833_s5] sm:$0xf] }
0x111c   :  { %3078 = vtanh.f32 %v1046_v1  ;;  %v1241_v1 = vld [vmem:[%s3834_s1] sm:$0xff]  ;;  %2872 = vmatprep.subr.msk.mxu1 %vm56_vm0, %v1243_v0 }
0x111d   :  { %3080 = vpow2.f32 %v2651_v9  ;;  %2873 = vmatpush3.msk.msra.mxu1 %vm56_vm0, %v1243_v0  ;;  %v3534_v9 = vld [vmem:[%s3832_s6 + $0x8] sm:$0xff]  ;;  %2874 = vmatprep.mubr.msk.f32.mxu1 %vm49_vm1, %v1241_v1 }
0x111e   :  { %3082 = vpow2.f32 %v2652_v10  ;;  %v3543_v10 = vld [vmem:[%s3832_s6] sm:$0xff]  ;;  %2888 = vmatprep.subr.mxu1 %v3236_v3 }
0x1128   :  { %v3077_v2 = vpop.eup %3076 }
0x1129   :  { %v3079_v8 = vpop.eup %3078  ;;  %1071 = vrot.lane.b32.xlu0 %v3077_v2, %s3238_s26  ;;  %v1242_v2 = vld [vmem:[%s3834_s1 + $0x8] sm:$0xff] }
0x112a   :  { %1073 = vrot.lane.b32.xlu1 %v3079_v8, %s3238_s26  ;;  %v3081_v11 = vpop.eup %3080  ;;  %v3527_v8 = vld [vmem:[%s3832_s6 + $0x10] sm:$0xff]  ;;  %2875 = vmatmul.mubr.msk.f32.vlgmr.msra.gmra.mxu1 %vm49_vm1, %v1242_v2 }
0x112b   :  { %v3083_v13 = vpop.eup %3082  ;;  %v1053_v14 = vadd.f32 1.0, %v3081_v11  ;;  %2889 = vmatpush3.msra.mxu1 %v3511_v63  ;;  %2896 = vmatprep.mubr.msk.f32.mxu1 %vm3237_vm2, %v3236_v3 }
0x112c   :  { %v1054_v15 = vadd.f32 1.0, %v3083_v13  ;;  %2890 = vmatprep.subr.mxu1 %v3236_v3 }
0x112d   :  { %3084 = vrcp.f32 %v1053_v14  ;;  %2891 = vmatpush3.msra.mxu1 %v3527_v8 }
0x112e   :  { %3086 = vrcp.f32 %v1054_v15  ;;  %2892 = vmatprep.subr.mxu1 %v3236_v3 }
0x112f   :  { %2893 = vmatpush3.msra.mxu1 %v3534_v9 }
0x1130   :  { %2894 = vmatprep.subr.mxu1 %v3236_v3 }
0x1131   :  { %2895 = vmatpush3.msra.mxu1 %v3543_v10 }
0x1132   :  { %2910 = vmatprep.subr.mxu1 %v3236_v3 }
0x113a   :  { %v3085_v17 = vpop.eup %3084 }
0x113b   :  { %v3087_v19 = vpop.eup %3086  ;;  %v1067_v25 = vmul.f32 %v3085_v17, %v1063_v23 }
0x113c   :  { %v1068_v26 = vmul.f32 %v3087_v19, %v1064_v24  ;;  %v2656_v24 = vld [vmem:[%s3835_s7] ss:$0 sm:$0xff] }
0x119b   :  { %v1072_v18 = vpop.permute.xlu0 %1071 }
0x119c   :  { %v1074_v20 = vpop.permute.xlu1 %1073  ;;  %v1077_v21 = vmul.f32 %v3085_v17, %v1072_v18 }
0x119d   :  { %v1078_v22 = vmul.f32 %v3087_v19, %v1074_v20 }
0x119e   :  { %1081 = vrot.lane.b32.xlu0 %v1077_v21, %s3239_s4 }
0x119f   :  { %1083 = vrot.lane.b32.xlu1 %v1078_v22, %s3239_s4 }
0x11ea   :  { %v2876_v23 = vpop.f32.mrf.mxu1 }
0x1210   :  { %v1082_v27 = vpop.permute.xlu0 %1081 }
0x1211   :  { %v1084_v4 = vpop.permute.xlu1 %1083  ;;  %v1087_v28 = vadd.f32 %v1082_v27, %v1067_v25  ;;  %v1330_v25 = vpop.f32.mrf.mxu1  ;;  %v3580_v27 = vadd.f32 %v2876_v23, %v2656_v24 }
0x1212   :  { %v1088_v29 = vadd.f32 %v1084_v4, %v1068_v26  ;;  %v3578_v26 = vadd.f32 %v2656_v24, %v1330_v25 }
0x1213   :  { %3088 = vtanh.f32 %v1087_v28  ;;  %v1203_v55 = vrot.slane %v1087_v28, 7 }
0x1214   :  { %3090 = vtanh.f32 %v1088_v29  ;;  %v1204_v56 = vrot.slane %v1088_v29, 7 }
0x1220   :  { %v3089_v30 = vpop.eup %3088 }
0x1221   :  { %v3091_v5 = vpop.eup %3090  ;;  %1093 = vrot.lane.b32.xlu0 %v3089_v30, %s3238_s26 }
0x1222   :  { %1095 = vrot.lane.b32.xlu1 %v3091_v5, %s3238_s26 }
0x1293   :  { %v1094_v31 = vpop.permute.xlu0 %1093 }
0x1294   :  { %v1096_v6 = vpop.permute.xlu1 %1095  ;;  %v1099_v7 = vmul.f32 %v3085_v17, %v1094_v31 }
0x1295   :  { %v1100_v32 = vmul.f32 %v3087_v19, %v1096_v6 }
0x1296   :  { %v1103_v33 = vrot.slane %v1099_v7, 6 }
0x1297   :  { %v1104_v34 = vrot.slane %v1100_v32, 5 }
0x1299   :  { %v1105_v35 = vsel %vm266_vm3, %v1104_v34, %v1103_v33 }
0x129a   :  { %1106 = vrot.lane.b32.xlu0 %v1105_v35, %s3239_s4 }
0x130c   :  { %v1107_v36 = vpop.permute.xlu0 %1106 }
0x130d   :  { %2870 = vmatmul.mubr.msk.f32.vlgmr.msra.gmra.mxu0 %vm135_vm4, %v1107_v36 }
0x130e   :  { %2885 = vmatprep.mubr.msk.f32.mxu0 %vm3237_vm2, %v3236_v3  ;;  %2878 = vmatpush3.msra.mxu0 %v3511_v63 }
0x130f   :  { %2879 = vmatprep.subr.mxu0 %v3236_v3 }
0x1310   :  { %2880 = vmatpush3.msra.mxu0 %v3527_v8 }
0x1311   :  { %2881 = vmatprep.subr.mxu0 %v3236_v3 }
0x1312   :  { %2882 = vmatpush3.msra.mxu0 %v3534_v9 }
0x1313   :  { %2883 = vmatprep.subr.mxu0 %v3236_v3 }
0x1314   :  { %2884 = vmatpush3.msra.mxu0 %v3543_v10 }
0x1315   :  { %2899 = vmatprep.subr.mxu0 %v3236_v3 }
0x13cd   :  { %v1176_v37 = vpop.f32.mrf.mxu0 }
0x13ce   :  { %v1181_v38 = vrot.slane %v1176_v37, 1  ;;  %v1182_v39 = vrot.slane %v1176_v37, 2 }
0x13cf   :  { %v2871_v40 = vpop.f32.mrf.mxu0 }
0x13d0   :  { %v1185_v41 = vadd.f32 %v1181_v38, %v3367_v16  ;;  %v1186_v42 = vadd.f32 %v1182_v39, %v3364_v12 }
0x13d2   :  { %3092 = vtanh.f32 %v1185_v41  ;;  %v2654_v45 = vmul.f32 -1.442695, %v1185_v41  ;;  %v2655_v46 = vmul.f32 -1.442695, %v1186_v42 }
0x13d3   :  { %3094 = vtanh.f32 %v1186_v42 }
0x13d4   :  { %3096 = vpow2.f32 %v2654_v45 }
0x13d5   :  { %3098 = vpow2.f32 %v2655_v46 }
0x13df   :  { %v3093_v43 = vpop.eup %3092 }
0x13e0   :  { %v3095_v44 = vpop.eup %3094  ;;  %1211 = vrot.lane.b32.xlu1 %v3093_v43, %s3238_s26 }
0x13e1   :  { %1213 = vrot.lane.b32.xlu0 %v3095_v44, %s3238_s26  ;;  %v3097_v47 = vpop.eup %3096 }
0x13e2   :  { %v3099_v48 = vpop.eup %3098  ;;  %v1193_v49 = vadd.f32 1.0, %v3097_v47 }
0x13e3   :  { %v1194_v50 = vadd.f32 1.0, %v3099_v48 }
0x13e4   :  { %3100 = vrcp.f32 %v1193_v49 }
0x13e5   :  { %3102 = vrcp.f32 %v1194_v50 }
0x13f1   :  { %v3101_v16 = vpop.eup %3100 }
0x13f2   :  { %v3103_v51 = vpop.eup %3102  ;;  %v1207_v57 = vmul.f32 %v3101_v16, %v1203_v55 }
0x13f3   :  { %v1208_v58 = vmul.f32 %v3103_v51, %v1204_v56 }
0x1452   :  { %v1212_v12 = vpop.permute.xlu1 %1211 }
0x1453   :  { %v1214_v52 = vpop.permute.xlu0 %1213  ;;  %v1217_v53 = vmul.f32 %v3101_v16, %v1212_v12 }
0x1454   :  { %v1218_v54 = vmul.f32 %v3103_v51, %v1214_v52 }
0x1455   :  { %1221 = vrot.lane.b32.xlu1 %v1217_v53, %s3239_s4 }
0x1456   :  { %1223 = vrot.lane.b32.xlu0 %v1218_v54, %s3239_s4 }
0x14c7   :  { %v1222_v59 = vpop.permute.xlu1 %1221 }
0x14c8   :  { %v1224_v60 = vpop.permute.xlu0 %1223  ;;  %v3502_v61 = vadd.f32 %v1222_v59, %v1207_v57 }
0x14c9   :  { %v3504_v62 = vadd.f32 %v1224_v60, %v1208_v58 }
0x14ca   :  { %3104 = vtanh.f32 %v3502_v61  ;;  %v1440_v43 = vrot.slane %v3502_v61, 7 }
0x14cb   :  { %3106 = vtanh.f32 %v3504_v62  ;;  %v1441_v45 = vrot.slane %v3504_v62, 7 }
0x14d7   :  { %v3105_v11 = vpop.eup %3104 }
0x14d8   :  { %v3107_v13 = vpop.eup %3106  ;;  %1233 = vrot.lane.b32.xlu1 %v3105_v11, %s3238_s26 }
0x14d9   :  { %1235 = vrot.lane.b32.xlu0 %v3107_v13, %s3238_s26 }
0x154a   :  { %v1234_v14 = vpop.permute.xlu1 %1233 }
0x154b   :  { %v1236_v15 = vpop.permute.xlu0 %1235  ;;  %v1239_v17 = vmul.f32 %v3101_v16, %v1234_v14 }
0x154c   :  { %v1240_v18 = vmul.f32 %v3103_v51, %v1236_v15 }
0x154d   :  { %v1341_v19 = vrot.slane %v1239_v17, 7 }
0x154e   :  { %v1342_v20 = vrot.slane %v1240_v18, 6 }
0x1550   :  { %v1343_v21 = vsel %vm266_vm3, %v1342_v20, %v1341_v19 }
0x1551   :  { %1344 = vrot.lane.b32.xlu1 %v1343_v21, %s3239_s4 }
0x15c3   :  { %v1345_v22 = vpop.permute.xlu1 %1344 }
0x15c4   :  { %2886 = vmatmul.mubr.msk.f32.vlgmr.msra.gmra.mxu0 %vm135_vm4, %v1345_v22 }
0x15c5   :  { %2900 = vmatpush3.msra.mxu0 %v3511_v63  ;;  %2907 = vmatprep.mubr.msk.f32.mxu0 %vm3237_vm2, %v3236_v3 }
0x15c6   :  { %2901 = vmatprep.subr.mxu0 %v3236_v3 }
0x15c7   :  { %2902 = vmatpush3.msra.mxu0 %v3527_v8 }
0x15c8   :  { %2903 = vmatprep.subr.mxu0 %v3236_v3 }
0x15c9   :  { %2904 = vmatpush3.msra.mxu0 %v3534_v9 }
0x15ca   :  { %2905 = vmatprep.subr.mxu0 %v3236_v3 }
0x15cb   :  { %2906 = vmatpush3.msra.mxu0 %v3543_v10 }
0x15cc   :  { %2921 = vmatprep.subr.mxu0 %v3236_v3 }
0x1684   :  { %v1414_v4 = vpop.f32.mrf.mxu0 }
0x1685   :  { %v1419_v28 = vrot.slane %v1414_v4, 1  ;;  %v1422_v29 = vadd.f32 %v1414_v4, %v3578_v26 }
0x1686   :  { %v2887_v30 = vpop.f32.mrf.mxu0 }
0x1687   :  { %v1423_v5 = vadd.f32 %v1419_v28, %v3580_v27  ;;  %3108 = vtanh.f32 %v1422_v29  ;;  %v2661_v7 = vmul.f32 -1.442695, %v1422_v29 }
0x1689   :  { %3110 = vtanh.f32 %v1423_v5  ;;  %v2662_v32 = vmul.f32 -1.442695, %v1423_v5 }
0x168a   :  { %3112 = vpow2.f32 %v2661_v7 }
0x168b   :  { %3114 = vpow2.f32 %v2662_v32 }
0x1694   :  { %v3109_v31 = vpop.eup %3108 }
0x1695   :  { %1448 = vrot.lane.b32.xlu1 %v3109_v31, %s3238_s26 }
0x1696   :  { %v3111_v6 = vpop.eup %3110 }
0x1697   :  { %1450 = vrot.lane.b32.xlu0 %v3111_v6, %s3238_s26  ;;  %v3113_v33 = vpop.eup %3112 }
0x1698   :  { %v3115_v34 = vpop.eup %3114  ;;  %v1430_v35 = vadd.f32 1.0, %v3113_v33 }
0x1699   :  { %v1431_v36 = vadd.f32 1.0, %v3115_v34 }
0x169a   :  { %3116 = vrcp.f32 %v1430_v35 }
0x169b   :  { %3118 = vrcp.f32 %v1431_v36 }
0x16a7   :  { %v3117_v37 = vpop.eup %3116 }
0x16a8   :  { %v3119_v40 = vpop.eup %3118  ;;  %v1444_v44 = vmul.f32 %v3117_v37, %v1440_v43 }
0x16a9   :  { %v1445_v48 = vmul.f32 %v3119_v40, %v1441_v45 }
0x1707   :  { %v1449_v38 = vpop.permute.xlu1 %1448 }
0x1708   :  { %v1454_v39 = vmul.f32 %v3117_v37, %v1449_v38 }
0x1709   :  { %v1451_v41 = vpop.permute.xlu0 %1450 }
0x170a   :  { %1458 = vrot.lane.b32.xlu1 %v1454_v39, %s3239_s4  ;;  %v1455_v42 = vmul.f32 %v3119_v40, %v1451_v41 }
0x170c   :  { %1460 = vrot.lane.b32.xlu0 %v1455_v42, %s3239_s4 }
0x177c   :  { %v1459_v46 = vpop.permute.xlu1 %1458 }
0x177d   :  { %v3590_v47 = vadd.f32 %v1459_v46, %v1444_v44 }
0x177e   :  { %v1461_v49 = vpop.permute.xlu0 %1460 }
0x177f   :  { %3120 = vtanh.f32 %v3590_v47  ;;  %v1465_v50 = vadd.f32 %v1461_v49, %v1445_v48  ;;  %v1587_v4 = vrot.slane %v3590_v47, 7 }
0x1781   :  { %3122 = vtanh.f32 %v1465_v50  ;;  %v1588_v24 = vrot.slane %v1465_v50, 7 }
0x178c   :  { %v3121_v16 = vpop.eup %3120 }
0x178d   :  { %1470 = vrot.lane.b32.xlu1 %v3121_v16, %s3238_s26 }
0x178e   :  { %v3123_v12 = vpop.eup %3122 }
0x178f   :  { %1472 = vrot.lane.b32.xlu0 %v3123_v12, %s3238_s26 }
0x17ff   :  { %v1471_v51 = vpop.permute.xlu1 %1470 }
0x1800   :  { %v3597_v54 = vmul.f32 %v3117_v37, %v1471_v51 }
0x1801   :  { %v1473_v52 = vpop.permute.xlu0 %1472 }
0x1802   :  { %v3595_v53 = vmul.f32 %v3119_v40, %v1473_v52 }
0x1804   :  { %v1489_v55 = vrot.slane %v3595_v53, 7 }
0x1806   :  { %v1490_v56 = vsel %vm266_vm3, %v1489_v55, %v3597_v54 }
0x1807   :  { %1491 = vrot.lane.b32.xlu0 %v1490_v56, %s3239_s4 }
0x1879   :  { %v1492_v57 = vpop.permute.xlu0 %1491 }
0x187a   :  { %2897 = vmatmul.mubr.msk.f32.vlgmr.msra.gmra.mxu1 %vm135_vm4, %v1492_v57 }
0x187b   :  { %2911 = vmatpush3.msra.mxu1 %v3511_v63  ;;  %2918 = vmatprep.mubr.msk.f32.mxu1 %vm3237_vm2, %v3236_v3 }
0x187c   :  { %2912 = vmatprep.subr.mxu1 %v3236_v3 }
0x187d   :  { %2913 = vmatpush3.msra.mxu1 %v3527_v8 }
0x187e   :  { %2914 = vmatprep.subr.mxu1 %v3236_v3 }
0x187f   :  { %2915 = vmatpush3.msra.mxu1 %v3534_v9 }
0x1880   :  { %2916 = vmatprep.subr.mxu1 %v3236_v3 }
0x1881   :  { %2917 = vmatpush3.msra.mxu1 %v3543_v10 }
0x1882   :  { %2932 = vmatprep.subr.mxu1 %v3236_v3 }
0x193a   :  { %v1561_v58 = vpop.f32.mrf.mxu1 }
0x193b   :  { %v1566_v59 = vrot.slane %v1561_v58, 7  ;;  %v1570_v60 = vadd.f32 %v1561_v58, %v3580_v27 }
0x193c   :  { %v2898_v61 = vpop.f32.mrf.mxu1 }
0x193d   :  { %v1569_v62 = vadd.f32 %v1566_v59, %v3578_v26  ;;  %3124 = vtanh.f32 %v1570_v60  ;;  %v2665_v2 = vmul.f32 -1.442695, %v1570_v60 }
0x193f   :  { %3126 = vtanh.f32 %v1569_v62  ;;  %v2664_v11 = vmul.f32 -1.442695, %v1569_v62 }
0x1940   :  { %3128 = vpow2.f32 %v2665_v2 }
0x1941   :  { %3130 = vpow2.f32 %v2664_v11 }
0x194a   :  { %v3125_v0 = vpop.eup %3124 }
0x194b   :  { %1597 = vrot.lane.b32.xlu0 %v3125_v0, %s3238_s26 }
0x194c   :  { %v3127_v1 = vpop.eup %3126 }
0x194d   :  { %1595 = vrot.lane.b32.xlu1 %v3127_v1, %s3238_s26  ;;  %v3129_v13 = vpop.eup %3128 }
0x194e   :  { %v3131_v14 = vpop.eup %3130  ;;  %v1578_v15 = vadd.f32 1.0, %v3129_v13 }
0x194f   :  { %v1577_v17 = vadd.f32 1.0, %v3131_v14 }
0x1950   :  { %3132 = vrcp.f32 %v1578_v15 }
0x1951   :  { %3134 = vrcp.f32 %v1577_v17 }
0x195d   :  { %v3133_v18 = vpop.eup %3132 }
0x195e   :  { %v3135_v21 = vpop.eup %3134  ;;  %v1592_v25 = vmul.f32 %v3133_v18, %v1588_v24 }
0x195f   :  { %v1591_v30 = vmul.f32 %v3135_v21, %v1587_v4 }
0x19bd   :  { %v1598_v19 = vpop.permute.xlu0 %1597 }
0x19be   :  { %v1602_v20 = vmul.f32 %v3133_v18, %v1598_v19 }
0x19bf   :  { %v1596_v22 = vpop.permute.xlu1 %1595 }
0x19c0   :  { %1607 = vrot.lane.b32.xlu0 %v1602_v20, %s3239_s4  ;;  %v1601_v23 = vmul.f32 %v3135_v21, %v1596_v22 }
0x19c2   :  { %1605 = vrot.lane.b32.xlu1 %v1601_v23, %s3239_s4 }
0x1a32   :  { %v1608_v28 = vpop.permute.xlu0 %1607 }
0x1a33   :  { %v1612_v29 = vadd.f32 %v1608_v28, %v1592_v25 }
0x1a34   :  { %v1606_v5 = vpop.permute.xlu1 %1605 }
0x1a35   :  { %3136 = vtanh.f32 %v1612_v29  ;;  %v1611_v31 = vadd.f32 %v1606_v5, %v1591_v30  ;;  %v1736_v60 = vrot.slane %v1612_v29, 7 }
0x1a37   :  { %3138 = vtanh.f32 %v1611_v31  ;;  %v1735_v59 = vrot.slane %v1611_v31, 7 }
0x1a42   :  { %v3137_v6 = vpop.eup %3136 }
0x1a43   :  { %1619 = vrot.lane.b32.xlu0 %v3137_v6, %s3238_s26 }
0x1a44   :  { %v3139_v7 = vpop.eup %3138 }
0x1a45   :  { %1617 = vrot.lane.b32.xlu1 %v3139_v7, %s3238_s26 }
0x1ab5   :  { %v1620_v32 = vpop.permute.xlu0 %1619 }
0x1ab6   :  { %v3625_v35 = vmul.f32 %v3133_v18, %v1620_v32 }
0x1ab7   :  { %v1618_v33 = vpop.permute.xlu1 %1617 }
0x1ab8   :  { %v3623_v34 = vmul.f32 %v3135_v21, %v1618_v33 }
0x1aba   :  { %v1636_v36 = vrot.slane %v3623_v34, 1 }
0x1abc   :  { %v1637_v37 = vsel %vm266_vm3, %v3625_v35, %v1636_v36 }
0x1abd   :  { %1638 = vrot.lane.b32.xlu1 %v1637_v37, %s3239_s4 }
0x1b2f   :  { %v1639_v38 = vpop.permute.xlu1 %1638 }
0x1b30   :  { %2908 = vmatmul.mubr.msk.f32.vlgmr.msra.gmra.mxu0 %vm135_vm4, %v1639_v38 }
0x1b31   :  { %2922 = vmatpush3.msra.mxu0 %v3511_v63  ;;  %2929 = vmatprep.mubr.msk.f32.mxu0 %vm3237_vm2, %v3236_v3 }
0x1b32   :  { %2923 = vmatprep.subr.mxu0 %v3236_v3 }
0x1b33   :  { %2924 = vmatpush3.msra.mxu0 %v3527_v8 }
0x1b34   :  { %2925 = vmatprep.subr.mxu0 %v3236_v3 }
0x1b35   :  { %2926 = vmatpush3.msra.mxu0 %v3534_v9 }
0x1b36   :  { %2927 = vmatprep.subr.mxu0 %v3236_v3 }
0x1b37   :  { %2928 = vmatpush3.msra.mxu0 %v3543_v10 }
0x1b38   :  { %2943 = vmatprep.subr.mxu0 %v3236_v3 }
0x1bf0   :  { %v1708_v39 = vpop.f32.mrf.mxu0 }
0x1bf1   :  { %v1713_v40 = vrot.slane %v1708_v39, 6  ;;  %v1714_v41 = vrot.slane %v1708_v39, 7 }
0x1bf2   :  { %v2909_v42 = vpop.f32.mrf.mxu0 }
0x1bf3   :  { %v1717_v43 = vadd.f32 %v1713_v40, %v3578_v26  ;;  %v1718_v44 = vadd.f32 %v1714_v41, %v3580_v27 }
0x1bf5   :  { %3140 = vtanh.f32 %v1717_v43  ;;  %v2667_v47 = vmul.f32 -1.442695, %v1717_v43  ;;  %v2668_v48 = vmul.f32 -1.442695, %v1718_v44 }
0x1bf6   :  { %3142 = vtanh.f32 %v1718_v44 }
0x1bf7   :  { %3144 = vpow2.f32 %v2667_v47 }
0x1bf8   :  { %3146 = vpow2.f32 %v2668_v48 }
0x1c02   :  { %v3141_v45 = vpop.eup %3140 }
0x1c03   :  { %v3143_v46 = vpop.eup %3142  ;;  %1743 = vrot.lane.b32.xlu0 %v3141_v45, %s3238_s26 }
0x1c04   :  { %1745 = vrot.lane.b32.xlu1 %v3143_v46, %s3238_s26  ;;  %v3145_v49 = vpop.eup %3144 }
0x1c05   :  { %v3147_v50 = vpop.eup %3146  ;;  %v1725_v16 = vadd.f32 1.0, %v3145_v49 }
0x1c06   :  { %v1726_v12 = vadd.f32 1.0, %v3147_v50 }
0x1c07   :  { %3148 = vrcp.f32 %v1725_v16 }
0x1c08   :  { %3150 = vrcp.f32 %v1726_v12 }
0x1c14   :  { %v3149_v51 = vpop.eup %3148 }
0x1c15   :  { %v3151_v55 = vpop.eup %3150  ;;  %v1739_v61 = vmul.f32 %v3149_v51, %v1735_v59 }
0x1c16   :  { %v1740_v62 = vmul.f32 %v3151_v55, %v1736_v60 }
0x1c75   :  { %v1744_v52 = vpop.permute.xlu0 %1743 }
0x1c76   :  { %v1746_v56 = vpop.permute.xlu1 %1745  ;;  %v1749_v57 = vmul.f32 %v3149_v51, %v1744_v52 }
0x1c77   :  { %v1750_v58 = vmul.f32 %v3151_v55, %v1746_v56 }
0x1c78   :  { %1753 = vrot.lane.b32.xlu0 %v1749_v57, %s3239_s4 }
0x1c79   :  { %1755 = vrot.lane.b32.xlu1 %v1750_v58, %s3239_s4 }
0x1cea   :  { %v1754_v0 = vpop.permute.xlu0 %1753 }
0x1ceb   :  { %v1756_v1 = vpop.permute.xlu1 %1755  ;;  %v1759_v2 = vadd.f32 %v1754_v0, %v1739_v61 }
0x1cec   :  { %v1760_v11 = vadd.f32 %v1756_v1, %v1740_v62 }
0x1ced   :  { %3152 = vtanh.f32 %v1759_v2  ;;  %v1884_v44 = vrot.slane %v1759_v2, 7 }
0x1cee   :  { %3154 = vtanh.f32 %v1760_v11  ;;  %v1885_v45 = vrot.slane %v1760_v11, 7 }
0x1cfa   :  { %v3153_v13 = vpop.eup %3152 }
0x1cfb   :  { %v3155_v14 = vpop.eup %3154  ;;  %1765 = vrot.lane.b32.xlu0 %v3153_v13, %s3238_s26 }
0x1cfc   :  { %1767 = vrot.lane.b32.xlu1 %v3155_v14, %s3238_s26 }
0x1d6d   :  { %v1766_v15 = vpop.permute.xlu0 %1765 }
0x1d6e   :  { %v1768_v17 = vpop.permute.xlu1 %1767  ;;  %v3650_v18 = vmul.f32 %v3149_v51, %v1766_v15 }
0x1d6f   :  { %v3652_v19 = vmul.f32 %v3151_v55, %v1768_v17 }
0x1d70   :  { %v1784_v20 = vrot.slane %v3650_v18, 2 }
0x1d71   :  { %v1785_v21 = vrot.slane %v3652_v19, 1 }
0x1d73   :  { %v1786_v22 = vsel %vm266_vm3, %v1785_v21, %v1784_v20 }
0x1d74   :  { %1787 = vrot.lane.b32.xlu0 %v1786_v22, %s3239_s4 }
0x1de6   :  { %v1788_v23 = vpop.permute.xlu0 %1787 }
0x1de7   :  { %2919 = vmatmul.mubr.msk.f32.vlgmr.msra.gmra.mxu1 %vm135_vm4, %v1788_v23 }
0x1de8   :  { %2933 = vmatpush3.msra.mxu1 %v3511_v63  ;;  %2940 = vmatprep.mubr.msk.f32.mxu1 %vm3237_vm2, %v3236_v3 }
0x1de9   :  { %2934 = vmatprep.subr.mxu1 %v3236_v3 }
0x1dea   :  { %2935 = vmatpush3.msra.mxu1 %v3527_v8 }
0x1deb   :  { %2936 = vmatprep.subr.mxu1 %v3236_v3 }
0x1dec   :  { %2937 = vmatpush3.msra.mxu1 %v3534_v9 }
0x1ded   :  { %2938 = vmatprep.subr.mxu1 %v3236_v3 }
0x1dee   :  { %2939 = vmatpush3.msra.mxu1 %v3543_v10 }
0x1def   :  { %2954 = vmatprep.subr.mxu1 %v3236_v3 }
0x1ea7   :  { %v1857_v24 = vpop.f32.mrf.mxu1 }
0x1ea8   :  { %v1862_v25 = vrot.slane %v1857_v24, 5  ;;  %v1863_v4 = vrot.slane %v1857_v24, 6 }
0x1ea9   :  { %v2920_v28 = vpop.f32.mrf.mxu1 }
0x1eaa   :  { %v1866_v29 = vadd.f32 %v1862_v25, %v3578_v26  ;;  %v1867_v30 = vadd.f32 %v1863_v4, %v3580_v27 }
0x1eac   :  { %3156 = vtanh.f32 %v1866_v29  ;;  %v2670_v6 = vmul.f32 -1.442695, %v1866_v29  ;;  %v2671_v7 = vmul.f32 -1.442695, %v1867_v30 }
0x1ead   :  { %3158 = vtanh.f32 %v1867_v30 }
0x1eae   :  { %3160 = vpow2.f32 %v2670_v6 }
0x1eaf   :  { %3162 = vpow2.f32 %v2671_v7 }
0x1eb9   :  { %v3157_v5 = vpop.eup %3156 }
0x1eba   :  { %v3159_v31 = vpop.eup %3158  ;;  %1892 = vrot.lane.b32.xlu1 %v3157_v5, %s3238_s26 }
0x1ebb   :  { %1894 = vrot.lane.b32.xlu0 %v3159_v31, %s3238_s26  ;;  %v3161_v32 = vpop.eup %3160 }
0x1ebc   :  { %v3163_v33 = vpop.eup %3162  ;;  %v1874_v36 = vadd.f32 1.0, %v3161_v32 }
0x1ebd   :  { %v1875_v37 = vadd.f32 1.0, %v3163_v33 }
0x1ebe   :  { %3164 = vrcp.f32 %v1874_v36 }
0x1ebf   :  { %3166 = vrcp.f32 %v1875_v37 }
0x1ecb   :  { %v3165_v38 = vpop.eup %3164 }
0x1ecc   :  { %v3167_v40 = vpop.eup %3166  ;;  %v1888_v46 = vmul.f32 %v3165_v38, %v1884_v44 }
0x1ecd   :  { %v1889_v47 = vmul.f32 %v3167_v40, %v1885_v45 }
0x1f2c   :  { %v1893_v39 = vpop.permute.xlu1 %1892 }
0x1f2d   :  { %v1895_v41 = vpop.permute.xlu0 %1894  ;;  %v1898_v42 = vmul.f32 %v3165_v38, %v1893_v39 }
0x1f2e   :  { %v1899_v43 = vmul.f32 %v3167_v40, %v1895_v41 }
0x1f2f   :  { %1902 = vrot.lane.b32.xlu1 %v1898_v42, %s3239_s4 }
0x1f30   :  { %1904 = vrot.lane.b32.xlu0 %v1899_v43, %s3239_s4 }
0x1fa1   :  { %v1903_v48 = vpop.permute.xlu1 %1902 }
0x1fa2   :  { %v1905_v49 = vpop.permute.xlu0 %1904  ;;  %v1908_v50 = vadd.f32 %v1903_v48, %v1888_v46 }
0x1fa3   :  { %v1909_v16 = vadd.f32 %v1905_v49, %v1889_v47 }
0x1fa4   :  { %3168 = vtanh.f32 %v1908_v50  ;;  %v2033_v31 = vrot.slane %v1908_v50, 7 }
0x1fa5   :  { %3170 = vtanh.f32 %v1909_v16  ;;  %v2034_v6 = vrot.slane %v1909_v16, 7 }
0x1fb1   :  { %v3169_v12 = vpop.eup %3168 }
0x1fb2   :  { %v3171_v51 = vpop.eup %3170  ;;  %1914 = vrot.lane.b32.xlu1 %v3169_v12, %s3238_s26 }
0x1fb3   :  { %1916 = vrot.lane.b32.xlu0 %v3171_v51, %s3238_s26 }
0x2024   :  { %v1915_v52 = vpop.permute.xlu1 %1914 }
0x2025   :  { %v1917_v55 = vpop.permute.xlu0 %1916  ;;  %v3677_v56 = vmul.f32 %v3165_v38, %v1915_v52 }
0x2026   :  { %v3679_v57 = vmul.f32 %v3167_v40, %v1917_v55 }
0x2027   :  { %v1933_v58 = vrot.slane %v3677_v56, 3 }
0x2028   :  { %v1934_v59 = vrot.slane %v3679_v57, 2 }
0x202a   :  { %v1935_v60 = vsel %vm266_vm3, %v1934_v59, %v1933_v58 }
0x202b   :  { %1936 = vrot.lane.b32.xlu1 %v1935_v60, %s3239_s4 }
0x209d   :  { %v1937_v61 = vpop.permute.xlu1 %1936 }
0x209e   :  { %2930 = vmatmul.mubr.msk.f32.vlgmr.msra.gmra.mxu0 %vm135_vm4, %v1937_v61 }
0x209f   :  { %2944 = vmatpush3.msra.mxu0 %v3511_v63  ;;  %2951 = vmatprep.mubr.msk.f32.mxu0 %vm3237_vm2, %v3236_v3 }
0x20a0   :  { %2945 = vmatprep.subr.mxu0 %v3236_v3 }
0x20a1   :  { %2946 = vmatpush3.msra.mxu0 %v3527_v8 }
0x20a2   :  { %2947 = vmatprep.subr.mxu0 %v3236_v3 }
0x20a3   :  { %2948 = vmatpush3.msra.mxu0 %v3534_v9 }
0x20a4   :  { %2949 = vmatprep.subr.mxu0 %v3236_v3 }
0x20a5   :  { %2950 = vmatpush3.msra.mxu0 %v3543_v10 }
0x215e   :  { %v2006_v62 = vpop.f32.mrf.mxu0 }
0x215f   :  { %v2011_v0 = vrot.slane %v2006_v62, 4  ;;  %v2012_v1 = vrot.slane %v2006_v62, 5 }
0x2160   :  { %v2931_v2 = vpop.f32.mrf.mxu0 }
0x2161   :  { %v2015_v11 = vadd.f32 %v2011_v0, %v3578_v26  ;;  %v2016_v13 = vadd.f32 %v2012_v1, %v3580_v27 }
0x2163   :  { %3172 = vtanh.f32 %v2015_v11  ;;  %v2673_v17 = vmul.f32 -1.442695, %v2015_v11  ;;  %v2674_v20 = vmul.f32 -1.442695, %v2016_v13 }
0x2164   :  { %3174 = vtanh.f32 %v2016_v13 }
0x2165   :  { %3176 = vpow2.f32 %v2673_v17 }
0x2166   :  { %3178 = vpow2.f32 %v2674_v20 }
0x2170   :  { %v3173_v14 = vpop.eup %3172 }
0x2171   :  { %v3175_v15 = vpop.eup %3174  ;;  %2041 = vrot.lane.b32.xlu0 %v3173_v14, %s3238_s26 }
0x2172   :  { %2043 = vrot.lane.b32.xlu1 %v3175_v15, %s3238_s26  ;;  %v3177_v21 = vpop.eup %3176 }
0x2173   :  { %v3179_v22 = vpop.eup %3178  ;;  %v2023_v23 = vadd.f32 1.0, %v3177_v21 }
0x2174   :  { %v2024_v24 = vadd.f32 1.0, %v3179_v22 }
0x2175   :  { %3180 = vrcp.f32 %v2023_v23 }
0x2176   :  { %3182 = vrcp.f32 %v2024_v24 }
0x2182   :  { %v3181_v25 = vpop.eup %3180 }
0x2183   :  { %v3183_v28 = vpop.eup %3182  ;;  %v2037_v7 = vmul.f32 %v3181_v25, %v2033_v31 }
0x2184   :  { %v2038_v32 = vmul.f32 %v3183_v28, %v2034_v6 }
0x21e3   :  { %v2042_v4 = vpop.permute.xlu0 %2041 }
0x21e4   :  { %v2044_v29 = vpop.permute.xlu1 %2043  ;;  %v2047_v30 = vmul.f32 %v3181_v25, %v2042_v4 }
0x21e5   :  { %v2048_v5 = vmul.f32 %v3183_v28, %v2044_v29 }
0x21e6   :  { %2051 = vrot.lane.b32.xlu0 %v2047_v30, %s3239_s4 }
0x21e7   :  { %2053 = vrot.lane.b32.xlu1 %v2048_v5, %s3239_s4 }
0x2258   :  { %v2052_v33 = vpop.permute.xlu0 %2051 }
0x2259   :  { %v2054_v36 = vpop.permute.xlu1 %2053  ;;  %v2057_v37 = vadd.f32 %v2052_v33, %v2037_v7 }
0x225a   :  { %v2058_v38 = vadd.f32 %v2054_v36, %v2038_v32 }
0x225b   :  { %3184 = vtanh.f32 %v2057_v37  ;;  %v2182_v11 = vrot.slane %v2057_v37, 7 }
0x225c   :  { %3186 = vtanh.f32 %v2058_v38  ;;  %v2183_v13 = vrot.slane %v2058_v38, 7 }
0x2268   :  { %v3185_v39 = vpop.eup %3184 }
0x2269   :  { %v3187_v40 = vpop.eup %3186  ;;  %2063 = vrot.lane.b32.xlu0 %v3185_v39, %s3238_s26 }
0x226a   :  { %2065 = vrot.lane.b32.xlu1 %v3187_v40, %s3238_s26 }
0x22db   :  { %v2064_v41 = vpop.permute.xlu0 %2063 }
0x22dc   :  { %v2066_v42 = vpop.permute.xlu1 %2065  ;;  %v3703_v43 = vmul.f32 %v3181_v25, %v2064_v41 }
0x22dd   :  { %v3705_v44 = vmul.f32 %v3183_v28, %v2066_v42 }
0x22de   :  { %v2082_v45 = vrot.slane %v3703_v43, 4 }
0x22df   :  { %v2083_v46 = vrot.slane %v3705_v44, 3 }
0x22e1   :  { %v2084_v47 = vsel %vm266_vm3, %v2083_v46, %v2082_v45 }
0x22e2   :  { %2085 = vrot.lane.b32.xlu0 %v2084_v47, %s3239_s4 }
0x2354   :  { %v2086_v48 = vpop.permute.xlu0 %2085 }
0x2355   :  { %2941 = vmatmul.mubr.msk.f32.vlgmr.msra.gmra.mxu1 %vm135_vm4, %v2086_v48 }
0x2356   :  { %2955 = vmatpush3.msra.mxu1 %v3511_v63  ;;  %2962 = vmatprep.mubr.msk.f32.mxu1 %vm3237_vm2, %v3236_v3 }
0x2357   :  { %2956 = vmatprep.subr.mxu1 %v3236_v3 }
0x2358   :  { %2957 = vmatpush3.msra.mxu1 %v3527_v8 }
0x2359   :  { %2958 = vmatprep.subr.mxu1 %v3236_v3 }
0x235a   :  { %2959 = vmatpush3.msra.mxu1 %v3534_v9 }
0x235b   :  { %2960 = vmatprep.subr.mxu1 %v3236_v3 }
0x235c   :  { %2961 = vmatpush3.msra.mxu1 %v3543_v10 }
0x2415   :  { %v2155_v49 = vpop.f32.mrf.mxu1 }
0x2416   :  { %v2160_v50 = vrot.slane %v2155_v49, 3  ;;  %v2161_v16 = vrot.slane %v2155_v49, 4 }
0x2417   :  { %v2942_v12 = vpop.f32.mrf.mxu1 }
0x2418   :  { %v2164_v63 = vadd.f32 %v2160_v50, %v3578_v26  ;;  %v2165_v51 = vadd.f32 %v2161_v16, %v3580_v27 }
0x241a   :  { %3188 = vtanh.f32 %v2164_v63  ;;  %v2676_v9 = vmul.f32 -1.442695, %v2164_v63  ;;  %v2677_v3 = vmul.f32 -1.442695, %v2165_v51 }
0x241b   :  { %3190 = vtanh.f32 %v2165_v51 }
0x241c   :  { %3192 = vpow2.f32 %v2676_v9 }
0x241d   :  { %3194 = vpow2.f32 %v2677_v3 }
0x2427   :  { %v3189_v52 = vpop.eup %3188 }
0x2428   :  { %v3191_v8 = vpop.eup %3190  ;;  %2190 = vrot.lane.b32.xlu1 %v3189_v52, %s3238_s26 }
0x2429   :  { %2192 = vrot.lane.b32.xlu0 %v3191_v8, %s3238_s26  ;;  %v3193_v10 = vpop.eup %3192 }
0x242a   :  { %v3195_v55 = vpop.eup %3194  ;;  %v2172_v58 = vadd.f32 1.0, %v3193_v10 }
0x242b   :  { %v2173_v59 = vadd.f32 1.0, %v3195_v55 }
0x242c   :  { %3196 = vrcp.f32 %v2172_v58 }
0x242d   :  { %3198 = vrcp.f32 %v2173_v59 }
0x2439   :  { %v3197_v60 = vpop.eup %3196 }
0x243a   :  { %v3199_v62 = vpop.eup %3198  ;;  %v2186_v14 = vmul.f32 %v3197_v60, %v2182_v11 }
0x243b   :  { %v2187_v15 = vmul.f32 %v3199_v62, %v2183_v13 }
0x249a   :  { %v2191_v61 = vpop.permute.xlu1 %2190 }
0x249b   :  { %v2193_v0 = vpop.permute.xlu0 %2192  ;;  %v2196_v1 = vmul.f32 %v3197_v60, %v2191_v61 }
0x249c   :  { %v2197_v2 = vmul.f32 %v3199_v62, %v2193_v0 }
0x249d   :  { %2200 = vrot.lane.b32.xlu1 %v2196_v1, %s3239_s4 }
0x249e   :  { %2202 = vrot.lane.b32.xlu0 %v2197_v2, %s3239_s4 }
0x250f   :  { %v2201_v17 = vpop.permute.xlu1 %2200 }
0x2510   :  { %v2203_v20 = vpop.permute.xlu0 %2202  ;;  %v2206_v21 = vadd.f32 %v2201_v17, %v2186_v14 }
0x2511   :  { %v2207_v22 = vadd.f32 %v2203_v20, %v2187_v15 }
0x2512   :  { %3200 = vtanh.f32 %v2206_v21  ;;  %v2331_v52 = vrot.slane %v2206_v21, 7 }
0x2513   :  { %3202 = vtanh.f32 %v2207_v22  ;;  %v2332_v8 = vrot.slane %v2207_v22, 7 }
0x251f   :  { %v3201_v23 = vpop.eup %3200 }
0x2520   :  { %v3203_v24 = vpop.eup %3202  ;;  %2212 = vrot.lane.b32.xlu1 %v3201_v23, %s3238_s26 }
0x2521   :  { %2214 = vrot.lane.b32.xlu0 %v3203_v24, %s3238_s26 }
0x2592   :  { %v2213_v25 = vpop.permute.xlu1 %2212 }
0x2593   :  { %v2215_v4 = vpop.permute.xlu0 %2214  ;;  %v3729_v28 = vmul.f32 %v3197_v60, %v2213_v25 }
0x2594   :  { %v3731_v29 = vmul.f32 %v3199_v62, %v2215_v4 }
0x2595   :  { %v2231_v30 = vrot.slane %v3729_v28, 5 }
0x2596   :  { %v2232_v5 = vrot.slane %v3731_v29, 4 }
0x2598   :  { %v2233_v31 = vsel %vm266_vm3, %v2232_v5, %v2231_v30 }
0x2599   :  { %2234 = vrot.lane.b32.xlu1 %v2233_v31, %s3239_s4 }
0x260b   :  { %v2235_v6 = vpop.permute.xlu1 %2234 }
0x260c   :  { %2952 = vmatmul.mubr.msk.f32.vlgmr.msra.gmra.mxu0 %vm135_vm4, %v2235_v6 }
0x26cc   :  { %v2304_v7 = vpop.f32.mrf.mxu0 }
0x26cd   :  { %v2309_v32 = vrot.slane %v2304_v7, 2  ;;  %v2310_v33 = vrot.slane %v2304_v7, 3 }
0x26ce   :  { %v2953_v36 = vpop.f32.mrf.mxu0 }
0x26cf   :  { %v2313_v37 = vadd.f32 %v2309_v32, %v3578_v26  ;;  %v2314_v38 = vadd.f32 %v2310_v33, %v3580_v27 }
0x26d1   :  { %3204 = vtanh.f32 %v2313_v37  ;;  %v2679_v41 = vmul.f32 -1.442695, %v2313_v37  ;;  %v2680_v42 = vmul.f32 -1.442695, %v2314_v38 }
0x26d2   :  { %3206 = vtanh.f32 %v2314_v38 }
0x26d3   :  { %3208 = vpow2.f32 %v2679_v41 }
0x26d4   :  { %3210 = vpow2.f32 %v2680_v42 }
0x26de   :  { %v3205_v39 = vpop.eup %3204 }
0x26df   :  { %v3207_v40 = vpop.eup %3206  ;;  %2339 = vrot.lane.b32.xlu0 %v3205_v39, %s3238_s26 }
0x26e0   :  { %2341 = vrot.lane.b32.xlu1 %v3207_v40, %s3238_s26  ;;  %v3209_v45 = vpop.eup %3208 }
0x26e1   :  { %v3211_v46 = vpop.eup %3210  ;;  %v2321_v47 = vadd.f32 1.0, %v3209_v45 }
0x26e2   :  { %v2322_v48 = vadd.f32 1.0, %v3211_v46 }
0x26e3   :  { %3212 = vrcp.f32 %v2321_v47 }
0x26e4   :  { %3214 = vrcp.f32 %v2322_v48 }
0x26f0   :  { %v3213_v49 = vpop.eup %3212 }
0x26f1   :  { %v3215_v16 = vpop.eup %3214  ;;  %v2335_v9 = vmul.f32 %v3213_v49, %v2331_v52 }
0x26f2   :  { %v2336_v3 = vmul.f32 %v3215_v16, %v2332_v8 }
0x2751   :  { %v2340_v50 = vpop.permute.xlu0 %2339 }
0x2752   :  { %v2342_v12 = vpop.permute.xlu1 %2341  ;;  %v2345_v63 = vmul.f32 %v3213_v49, %v2340_v50 }
0x2753   :  { %v2346_v51 = vmul.f32 %v3215_v16, %v2342_v12 }
0x2754   :  { %2349 = vrot.lane.b32.xlu0 %v2345_v63, %s3239_s4 }
0x2755   :  { %2351 = vrot.lane.b32.xlu1 %v2346_v51, %s3239_s4 }
0x27c6   :  { %v2350_v10 = vpop.permute.xlu0 %2349 }
0x27c7   :  { %v2352_v55 = vpop.permute.xlu1 %2351  ;;  %v2355_v58 = vadd.f32 %v2350_v10, %v2335_v9 }
0x27c8   :  { %v2356_v59 = vadd.f32 %v2352_v55, %v2336_v3 }
0x27c9   :  { %3216 = vtanh.f32 %v2355_v58  ;;  %v2480_v39 = vrot.slane %v2355_v58, 7 }
0x27ca   :  { %3218 = vtanh.f32 %v2356_v59  ;;  %v2481_v40 = vrot.slane %v2356_v59, 7 }
0x27d6   :  { %v3217_v60 = vpop.eup %3216 }
0x27d7   :  { %v3219_v61 = vpop.eup %3218  ;;  %2361 = vrot.lane.b32.xlu0 %v3217_v60, %s3238_s26 }
0x27d8   :  { %2363 = vrot.lane.b32.xlu1 %v3219_v61, %s3238_s26 }
0x2849   :  { %v2362_v62 = vpop.permute.xlu0 %2361 }
0x284a   :  { %v2364_v0 = vpop.permute.xlu1 %2363  ;;  %v2367_v1 = vmul.f32 %v3213_v49, %v2362_v62  ;;  %v2684_v62 = vld [vmem:[%s3837_s9] ss:$0 sm:$0xff] }
0x284b   :  { %v3746_v2 = vmul.f32 %v3215_v16, %v2364_v0 }
0x284c   :  { %v2380_v11 = vrot.slane %v2367_v1, 6 }
0x284d   :  { %v2381_v13 = vrot.slane %v3746_v2, 5 }
0x284f   :  { %v2382_v14 = vsel %vm266_vm3, %v2381_v13, %v2380_v11 }
0x2850   :  { %2383 = vrot.lane.b32.xlu0 %v2382_v14, %s3239_s4 }
0x28c2   :  { %v2384_v15 = vpop.permute.xlu0 %2383 }
0x28c3   :  { %2963 = vmatmul.mubr.msk.f32.vlgmr.msra.gmra.mxu1 %vm135_vm4, %v2384_v15 }
0x2983   :  { %v2453_v17 = vpop.f32.mrf.mxu1 }
0x2984   :  { %v2458_v20 = vrot.slane %v2453_v17, 1  ;;  %v2459_v21 = vrot.slane %v2453_v17, 2 }
0x2985   :  { %v2964_v22 = vpop.f32.mrf.mxu1 }
0x2986   :  { %v2462_v23 = vadd.f32 %v2458_v20, %v3578_v26  ;;  %v2463_v24 = vadd.f32 %v2459_v21, %v3580_v27 }
0x2988   :  { %3220 = vtanh.f32 %v2462_v23  ;;  %v2682_v30 = vmul.f32 -1.442695, %v2462_v23  ;;  %v2683_v5 = vmul.f32 -1.442695, %v2463_v24 }
0x2989   :  { %3222 = vtanh.f32 %v2463_v24 }
0x298a   :  { %3224 = vpow2.f32 %v2682_v30 }
0x298b   :  { %3226 = vpow2.f32 %v2683_v5 }
0x2995   :  { %v3221_v25 = vpop.eup %3220 }
0x2996   :  { %v3223_v4 = vpop.eup %3222  ;;  %2488 = vrot.lane.b32.xlu1 %v3221_v25, %s3238_s26 }
0x2997   :  { %2490 = vrot.lane.b32.xlu0 %v3223_v4, %s3238_s26  ;;  %v3225_v31 = vpop.eup %3224 }
0x2998   :  { %v3227_v6 = vpop.eup %3226  ;;  %v2470_v7 = vadd.f32 1.0, %v3225_v31 }
0x2999   :  { %v2471_v32 = vadd.f32 1.0, %v3227_v6 }
0x299a   :  { %3228 = vrcp.f32 %v2470_v7 }
0x299b   :  { %3230 = vrcp.f32 %v2471_v32 }
0x29a7   :  { %v3229_v26 = vpop.eup %3228 }
0x29a8   :  { %v3231_v33 = vpop.eup %3230  ;;  %v2484_v41 = vmul.f32 %v3229_v26, %v2480_v39 }
0x29a9   :  { %v2485_v42 = vmul.f32 %v3231_v33, %v2481_v40 }
0x2a08   :  { %v2489_v27 = vpop.permute.xlu1 %2488 }
0x2a09   :  { %v2491_v36 = vpop.permute.xlu0 %2490  ;;  %v2494_v37 = vmul.f32 %v3229_v26, %v2489_v27 }
0x2a0a   :  { %v2495_v38 = vmul.f32 %v3231_v33, %v2491_v36 }
0x2a0b   :  { %2498 = vrot.lane.b32.xlu1 %v2494_v37, %s3239_s4 }
0x2a0c   :  { %2500 = vrot.lane.b32.xlu0 %v2495_v38, %s3239_s4 }
0x2a7d   :  { %v2499_v45 = vpop.permute.xlu1 %2498 }
0x2a7e   :  { %v2501_v46 = vpop.permute.xlu0 %2500  ;;  %v2504_v47 = vadd.f32 %v2499_v45, %v2484_v41 }
0x2a7f   :  { %v2505_v48 = vadd.f32 %v2501_v46, %v2485_v42 }
0x2a80   :  { %3232 = vtanh.f32 %v2504_v47 }
0x2a81   :  { %3234 = vtanh.f32 %v2505_v48 }
0x2a8d   :  { %v3233_v49 = vpop.eup %3232 }
0x2a8e   :  { %v3235_v50 = vpop.eup %3234  ;;  %2510 = vrot.lane.b32.xlu1 %v3233_v49, %s3238_s26 }
0x2a8f   :  { %2512 = vrot.lane.b32.xlu0 %v3235_v50, %s3238_s26 }
0x2a92   :  { %1480 = vrot.lane.b32.xlu1 %v3597_v54, %s3239_s4  ;;  %v2534_v54 = vld [vmem:[%s3836_s8 + $0x18] sm:$0xff] }
0x2a93   :  { %1627 = vrot.lane.b32.xlu0 %v3623_v34, %s3239_s4  ;;  %2965 = vmatprep.subr.mxu0 %v2534_v54  ;;  %v2532_v34 = vld [vmem:[%s3836_s8 + $0x8] sm:$0xff] }
0x2a94   :  { %2966 = vmatpush3.msra.mxu0 %v2534_v54 }
0x2a96   :  { %1775 = vrot.lane.b32.xlu1 %v3650_v18, %s3239_s4 }
0x2a97   :  { %1924 = vrot.lane.b32.xlu0 %v3677_v56, %s3239_s4 }
0x2a9a   :  { %2073 = vrot.lane.b32.xlu1 %v3703_v43, %s3239_s4 }
0x2a9b   :  { %2222 = vrot.lane.b32.xlu0 %v3729_v28, %s3239_s4 }
0x2a9e   :  { %2371 = vrot.lane.b32.xlu1 %v2367_v1, %s3239_s4 }
0x2a9f   :  { %1629 = vrot.lane.b32.xlu0 %v3625_v35, %s3239_s4  ;;  %v2531_v35 = vld [vmem:[%s3836_s8] sm:$0xff] }
0x2aa2   :  { %1482 = vrot.lane.b32.xlu1 %v3595_v53, %s3239_s4  ;;  %v2533_v53 = vld [vmem:[%s3836_s8 + $0x10] sm:$0xff] }
0x2aa3   :  { %1926 = vrot.lane.b32.xlu0 %v3679_v57, %s3239_s4  ;;  %2967 = vmatprep.subr.mxu0 %v2533_v53 }
0x2aa4   :  { %2968 = vmatpush3.msra.mxu0 %v2533_v53 }
0x2aa5   :  { %2969 = vmatprep.subr.mxu0 %v2532_v34 }
0x2aa6   :  { %1777 = vrot.lane.b32.xlu1 %v3652_v19, %s3239_s4  ;;  %2970 = vmatpush3.msra.mxu0 %v2532_v34 }
0x2aa7   :  { %2224 = vrot.lane.b32.xlu0 %v3731_v29, %s3239_s4  ;;  %2971 = vmatprep.subr.mxu0 %v2531_v35 }
0x2aa8   :  { %2972 = vmatpush3.msra.mxu0 %v2531_v35 }
0x2aaa   :  { %2075 = vrot.lane.b32.xlu1 %v3705_v44, %s3239_s4 }
0x2aae   :  { %2373 = vrot.lane.b32.xlu1 %v3746_v2, %s3239_s4 }
0x2b00   :  { %v2511_v18 = vpop.permute.xlu1 %2510 }
0x2b01   :  { %v2513_v19 = vpop.permute.xlu0 %2512  ;;  %v2516_v56 = vmul.f32 %v3229_v26, %v2511_v18 }
0x2b02   :  { %v2517_v43 = vmul.f32 %v3231_v33, %v2513_v19 }
0x2b03   :  { %2520 = vrot.lane.b32.xlu0 %v2516_v56, %s3239_s4 }
0x2b04   :  { %v1481_v57 = vpop.permute.xlu1 %1480 }
0x2b05   :  { %v1628_v44 = vpop.permute.xlu0 %1627  ;;  %1487 = vst.msk [vmem:[#allocation2] sm:$0x1] %vm1486_vm5, %v1481_v57 }
0x2b06   :  { %1634 = vst.msk [vmem:[#allocation2] sm:$0x2] %vm1633_vm6, %v1628_v44 }
0x2b07   :  { %2522 = vrot.lane.b32.xlu0 %v2517_v43, %s3239_s4 }
0x2b08   :  { %v1776_v28 = vpop.permute.xlu1 %1775 }
0x2b09   :  { %v1925_v29 = vpop.permute.xlu0 %1924  ;;  %1782 = vst.msk [vmem:[#allocation2] sm:$0x4] %vm1781_vm7, %v1776_v28 }
0x2b0a   :  { %1931 = vst.msk [vmem:[#allocation2] sm:$0x8] %vm1930_vm8, %v1925_v29 }
0x2b0c   :  { %v2074_v16 = vpop.permute.xlu1 %2073 }
0x2b0d   :  { %v2223_v12 = vpop.permute.xlu0 %2222  ;;  %2080 = vst.msk [vmem:[#allocation2] sm:$0x10] %vm2079_vm9, %v2074_v16 }
0x2b0e   :  { %2229 = vst.msk [vmem:[#allocation2] sm:$0x20] %vm2228_vm10, %v2223_v12 }
0x2b10   :  { %v2372_v63 = vpop.permute.xlu1 %2371 }
0x2b11   :  { %v1630_v51 = vpop.permute.xlu0 %1629  ;;  %2378 = vst.msk [vmem:[#allocation2] sm:$0x40] %vm2377_vm11, %v2372_v63 }
0x2b12   :  { %1635 = vst.msk [vmem:[#allocation2 + $0x8] sm:$0x2] %vm1633_vm6, %v1630_v51 }
0x2b14   :  { %v1483_v52 = vpop.permute.xlu1 %1482 }
0x2b15   :  { %v1927_v8 = vpop.permute.xlu0 %1926  ;;  %1488 = vst.msk [vmem:[#allocation2 + $0x8] sm:$0x1] %vm1486_vm5, %v1483_v52 }
0x2b16   :  { %1932 = vst.msk [vmem:[#allocation2 + $0x8] sm:$0x8] %vm1930_vm8, %v1927_v8 }
0x2b18   :  { %v1778_v9 = vpop.permute.xlu1 %1777 }
0x2b19   :  { %v2225_v3 = vpop.permute.xlu0 %2224  ;;  %1783 = vst.msk [vmem:[#allocation2 + $0x8] sm:$0x4] %vm1781_vm7, %v1778_v9 }
0x2b1a   :  { %2230 = vst.msk [vmem:[#allocation2 + $0x8] sm:$0x20] %vm2228_vm10, %v2225_v3 }
0x2b1c   :  { %v2076_v10 = vpop.permute.xlu1 %2075 }
0x2b1d   :  { %2081 = vst.msk [vmem:[#allocation2 + $0x8] sm:$0x10] %vm2079_vm9, %v2076_v10 }
0x2b20   :  { %v2374_v55 = vpop.permute.xlu1 %2373 }
0x2b21   :  { %2379 = vst.msk [vmem:[#allocation2 + $0x8] sm:$0x40] %vm2377_vm11, %v2374_v55 }
0x2b75   :  { %v2521_v58 = vpop.permute.xlu0 %2520 }
0x2b76   :  { %2527 = vst.msk [vmem:[#allocation2] sm:$0x80] %vm2526_vm12, %v2521_v58 }
0x2b79   :  { %v2523_v59 = vpop.permute.xlu0 %2522 }
0x2b7a   :  { %2528 = vst.msk [vmem:[#allocation2 + $0x8] sm:$0x80] %vm2526_vm12, %v2523_v59 }
0x2b7d   :  { %v2529_v60 = vld [vmem:[#allocation2] sm:$0xff] }
0x2b7e   :  { %2973 = vmatprep.mubr.msk.f32.mxu0 %vm135_vm4, %v2529_v60 }
0x2b81   :  { %v2530_v61 = vld [vmem:[#allocation2 + $0x8] sm:$0xff] }
0x2b82   :  { %2974 = vmatmul.mubr.msk.f32.vlgmr.msra.gmra.mxu0 %vm135_vm4, %v2530_v61 }
0x2c42   :  { %v2975_v0 = vpop.f32.mrf.mxu0 }
0x2c43   :  { %v2620_v1 = vadd.f32 %v2975_v0, %v2684_v62 }
0x2c44   :  { %v2614_v2 = vpop.f32.mrf.mxu0 }
0x2c45   :  { %2624 = vst.msk [vmem:[%s3838_s10 + $0x8] sm:$0xff] %vm49_vm1, %v2620_v1  ;;  %v2615_v11 = vadd.f32 %v2684_v62, %v2614_v2 }
0x2c47   :  { %2623 = vst.msk [vmem:[%s3838_s10] sm:$0xff] %vm49_vm1, %v2615_v11 }

</bundles_post_ra>
